<compile_context>
chip_gen: v5e
topology: v5e:2x2
jax: 0.10.0
libtpu: 0.0.40
codegen_flags: <defaults>
</compile_context>

<pallas_src>
import functools

import jax
import jax.numpy as jnp
from jax.experimental import pallas as pl
from jax.experimental.pallas import tpu as pltpu


def _fused_head_kernel(x_ref, w_ref, b_ref, o_ref, lhs_ref, *, nb, th, w, cin,
                       cout_pad, h_total, inv_hw):
    """Fused 3x3 conv + bias + ReLU + global-average-pool for one (batch, H) chunk.

    x_ref:   (nb, th+2, w+2, cin)   bf16, zero-padded NHWC input chunk (1-row halo)
    w_ref:   (9*cin, cout_pad)      bf16, im2col weights (row = (3*di+dj)*cin + c)
    b_ref:   (1, cout_pad)          f32 bias
    o_ref:   (nb, cout_pad)         f32 pooled output block, resident across H-chunks
    lhs_ref: (nb*th*w, 9*cin)       f32 VMEM scratch: assembled im2col LHS
    """
    hc = pl.program_id(1)

    @pl.when(hc == 0)
    def _init():
        o_ref[...] = jnp.zeros_like(o_ref)

    m = nb * th * w
    x = x_ref[...].astype(jnp.float32)            # (nb, th+2, w+2, cin)

    # Assemble the (m, 9*cin) im2col LHS in one narrow VMEM buffer
    # (static slices + major-dim-merging reshapes only).
    for t in range(9):
        di, dj = divmod(t, 3)
        lhs_ref[:, t * cin:(t + 1) * cin] = (
            x[:, di:di + th, dj:dj + w, :].reshape(m, cin))

    # Single bf16 MXU contraction, f32 accumulation.
    lhs = lhs_ref[...].astype(jnp.bfloat16)
    acc = jnp.dot(lhs, w_ref[...], preferred_element_type=jnp.float32)

    # Epilogue in f32: bias + ReLU.
    y = jnp.maximum(acc + b_ref[...], 0.0)        # (m, cout_pad)

    # Mask conv rows that exist only because H was padded to a multiple of th
    # (statically skipped when th divides H).
    if h_total % th != 0:
        ridx = jax.lax.broadcasted_iota(jnp.int32, (m, 1), 0)
        row_in_chunk = (ridx // w) % th
        y = jnp.where(hc * th + row_in_chunk < h_total, y, 0.0)

    # Partial global-average-pool: accumulate into the resident output block.
    o_ref[...] += jnp.sum(y.reshape(nb, th * w, cout_pad), axis=1)

    @pl.when(hc == pl.num_programs(1) - 1)
    def _finalize():
        o_ref[...] = o_ref[...] * inv_hw


def densenet_head_forward(x, conv_w, conv_b, *, batch_block=16, h_block=8):
    """DenseNetHead.forward with a synthetic conv-stem backbone.

    x:       (N, Cin, H, W) float32
    conv_w:  (Cout, Cin, 3, 3) float32
    conv_b:  (Cout,) float32
    returns: (N, Cout) float32
    """
    N, Cin, H, W = x.shape
    Cout = conv_w.shape[0]

    # --- tiling choices --------------------------------------------------
    nb = min(batch_block, N)
    if N > 1 and pl.cdiv(N, nb) < 2:      # >=2 parallel steps (v7x has 2 TCs)
        nb = pl.cdiv(N, 2)
    n_blocks = pl.cdiv(N, nb)
    n_pad = n_blocks * nb

    th = min(h_block, H)                  # H-chunk: bounds VMEM independent of H
    n_hc = pl.cdiv(H, th)
    h_pad = n_hc * th

    cout_pad = pl.cdiv(Cout, 128) * 128   # lane-dense output

    # --- layout prep (single fused XLA reformat; x read once) -------------
    # TODO(synk): accept NHWC directly from the producer to drop this transpose+pad.
    x_nhwc = jnp.transpose(x, (0, 2, 3, 1))
    x_pz = jnp.pad(x_nhwc, ((0, n_pad - N), (1, 1 + h_pad - H), (1, 1), (0, 0)))
    x_pz = x_pz.astype(jnp.bfloat16)      # halve HBM traffic for x
    # Overlapping H-chunks (1-row halo on each side), stacked on a chunk axis.
    x_ch = jnp.stack([x_pz[:, c * th:c * th + th + 2] for c in range(n_hc)],
                     axis=1)              # (n_pad, n_hc, th+2, W+2, Cin)

    # (Cout, Cin, 3, 3) -> (9*Cin, cout_pad); row index = (3*di+dj)*Cin + c.
    w_flat = jnp.transpose(conv_w, (2, 3, 1, 0)).reshape(9 * Cin, Cout)
    w_flat = jnp.pad(w_flat, ((0, 0), (0, cout_pad - Cout))).astype(jnp.bfloat16)
    b_pad = jnp.pad(conv_b, (0, cout_pad - Cout)).reshape(1, cout_pad)
    b_pad = b_pad.astype(jnp.float32)

    kernel = functools.partial(
        _fused_head_kernel, nb=nb, th=th, w=W, cin=Cin, cout_pad=cout_pad,
        h_total=H, inv_hw=float(1.0 / (H * W)))

    # Per-chip VMEM limit: raised on v5e/v6e (128 MiB physical), conservative
    # fallback that is also safe on v7x (64 MiB physical).
    try:
        vmem_cap = pltpu.get_tpu_info().vmem_capacity_bytes
        vmem_limit = max(32 * 1024 * 1024,
                         min(vmem_cap * 3 // 4, 96 * 1024 * 1024))
    except Exception:  # pragma: no cover - info query unavailable
        vmem_limit = 32 * 1024 * 1024

    cost = pl.CostEstimate(
        flops=2 * N * H * W * 9 * Cin * Cout,
        transcendentals=0,
        bytes_accessed=(x_ch.size * 2 + w_flat.size * 2 + b_pad.size * 4
                        + n_pad * cout_pad * 4))

    out = pl.pallas_call(
        kernel,
        out_shape=jax.ShapeDtypeStruct((n_blocks, nb, cout_pad), jnp.float32),
        grid_spec=pltpu.PrefetchScalarGridSpec(
            num_scalar_prefetch=0,
            grid=(n_blocks, n_hc),            # (parallel batch, arbitrary H-chunk)
            in_specs=[
                pl.BlockSpec((nb, None, th + 2, W + 2, Cin),
                             lambda i, c: (i, c, 0, 0, 0)),
                pl.BlockSpec((9 * Cin, cout_pad), lambda i, c: (0, 0)),
                pl.BlockSpec((1, cout_pad), lambda i, c: (0, 0)),
            ],
            out_specs=pl.BlockSpec((None, nb, cout_pad), lambda i, c: (i, 0, 0)),
            scratch_shapes=[pltpu.VMEM((nb * th * W, 9 * Cin), jnp.float32)],
        ),
        compiler_params=pltpu.CompilerParams(
            dimension_semantics=("parallel", "arbitrary"),
            vmem_limit_bytes=vmem_limit,
        ),
        cost_estimate=cost,
    )(x_ch, w_flat, b_pad)

    return out.reshape(n_pad, cout_pad)[:N, :Cout]


if __name__ == "__main__":
    key = jax.random.PRNGKey(0)
    k_x, k_w, k_b = jax.random.split(key, 3)

    N, Cin, H, W = 2, 4, 16, 16
    Cout = 32

    x = jax.random.normal(k_x, (N, Cin, H, W), dtype=jnp.float32)
    conv_w = 0.1 * jax.random.normal(k_w, (Cout, Cin, 3, 3), dtype=jnp.float32)
    conv_b = 0.01 * jax.random.normal(k_b, (Cout,), dtype=jnp.float32)

    out = densenet_head_forward(x, conv_w, conv_b)
    out = jax.block_until_ready(out)

    # Pure-JAX reference: conv -> relu -> adaptive_avg_pool2d((1,1)) -> flatten.
    def ref_head(xx, ww):
        feats = jax.lax.conv_general_dilated(
            xx, ww, window_strides=(1, 1), padding=((1, 1), (1, 1)),
            dimension_numbers=("NCHW", "OIHW", "NCHW"))
        feats = feats + conv_b[None, :, None, None]
        return jnp.mean(jnp.maximum(feats, 0.0), axis=(2, 3))

    # Tight check vs. a reference with bf16-rounded matmul operands (matches the
    # kernel's MXU numerics up to accumulation order).
    ref_q = ref_head(x.astype(jnp.bfloat16).astype(jnp.float32),
                     conv_w.astype(jnp.bfloat16).astype(jnp.float32))
    # Loose check vs. the exact f32 reference (bounds bf16 quantization error).
    ref = ref_head(x, conv_w)

    assert out.shape == (N, Cout)
    assert jnp.allclose(out, ref_q, atol=1e-3, rtol=1e-3), \
        float(jnp.max(jnp.abs(out - ref_q)))
    assert jnp.allclose(out, ref, atol=2e-2, rtol=2e-2), \
        float(jnp.max(jnp.abs(out - ref)))
    print("KERNEL_OK")
</pallas_src>

<mosaic_0001>
module attributes {stable_mosaic.version = 11 : i64} {
  func.func @_fused_head_kernel(%arg0: i32, %arg1: i32, %arg2: memref<1x1x10x18x4xbf16, #tpu.memory_space<vmem>>, %arg3: memref<36x128xbf16, #tpu.memory_space<vmem>>, %arg4: memref<1x128xf32, #tpu.memory_space<vmem>>, %arg5: memref<1x1x128xf32, #tpu.memory_space<vmem>>, %arg6: memref<128x36xf32, #tpu.memory_space<vmem>>) attributes {dimension_semantics = [#tpu.dimension_semantics<parallel>, #tpu.dimension_semantics<arbitrary>], iteration_bounds = array<i64: 2, 2>, scalar_prefetch = 0 : i64, scratch_operands = 1 : i64, tpu.core_type = #tpu.core_type<tc>, window_params = [{transform_indices = @transform_0, window_bounds = array<i64: 1, 1, 10, 18, 4>}, {pipeline_mode = #tpu.pipeline_mode<synchronous>, transform_indices = @transform_1, window_bounds = array<i64: 36, 128>}, {pipeline_mode = #tpu.pipeline_mode<synchronous>, transform_indices = @transform_2, window_bounds = array<i64: 1, 128>}, {transform_indices = @transform_3, window_bounds = array<i64: 1, 1, 128>}]} {
    %c0_i32 = arith.constant 0 : i32
    %0 = arith.cmpi eq, %arg1, %c0_i32 : i32
    %1 = arith.extui %0 : i1 to i32
    %c0_i32_0 = arith.constant 0 : i32
    %2 = arith.cmpi ne, %1, %c0_i32_0 : i32
    scf.if %2 {
      %cst_30 = arith.constant 0.000000e+00 : f32
      %53 = vector.broadcast %cst_30 : f32 to vector<1x128xf32>
      %c0_31 = arith.constant 0 : index
      %c0_32 = arith.constant 0 : index
      %c0_33 = arith.constant 0 : index
      %54 = vector.load %arg5[%c0_31, %c0_32, %c0_33] : memref<1x1x128xf32, #tpu.memory_space<vmem>>, vector<1x1x128xf32>
      %55 = vector.shape_cast %54 : vector<1x1x128xf32> to vector<1x128xf32>
      %56 = vector.shape_cast %53 : vector<1x128xf32> to vector<1x1x128xf32>
      tpu.vector_store %arg5[%c0_31, %c0_32, %c0_33], %56 {strides = array<i32>} : memref<1x1x128xf32, #tpu.memory_space<vmem>>, vector<1x1x128xf32>,
    } else {
    }
    %c0 = arith.constant 0 : index
    %c0_1 = arith.constant 0 : index
    %c0_2 = arith.constant 0 : index
    %c0_3 = arith.constant 0 : index
    %c0_4 = arith.constant 0 : index
    %3 = vector.load %arg2[%c0, %c0_1, %c0_2, %c0_3, %c0_4] : memref<1x1x10x18x4xbf16, #tpu.memory_space<vmem>>, vector<1x1x10x18x4xbf16>
    %4 = vector.shape_cast %3 : vector<1x1x10x18x4xbf16> to vector<1x10x18x4xbf16>
    %5 = arith.extf %4 : vector<1x10x18x4xbf16> to vector<1x10x18x4xf32>
    %6 = vector.extract_strided_slice %5 {offsets = [0, 0, 0, 0], sizes = [1, 8, 16, 4], strides = [1, 1, 1, 1]} : vector<1x10x18x4xf32> to vector<1x8x16x4xf32>
    %7 = vector.shape_cast %6 : vector<1x8x16x4xf32> to vector<128x4xf32>
    %c0_5 = arith.constant 0 : index
    %c0_6 = arith.constant 0 : index
    %8 = vector.load %arg6[%c0_5, %c0_6] : memref<128x36xf32, #tpu.memory_space<vmem>>, vector<128x4xf32>
    tpu.vector_store %arg6[%c0_5, %c0_6], %7 {strides = array<i32>} : memref<128x36xf32, #tpu.memory_space<vmem>>, vector<128x4xf32>,
    %9 = vector.extract_strided_slice %5 {offsets = [0, 0, 1, 0], sizes = [1, 8, 16, 4], strides = [1, 1, 1, 1]} : vector<1x10x18x4xf32> to vector<1x8x16x4xf32>
    %10 = vector.shape_cast %9 : vector<1x8x16x4xf32> to vector<128x4xf32>
    %c0_7 = arith.constant 0 : index
    %c4 = arith.constant 4 : index
    %11 = vector.load %arg6[%c0_7, %c4] : memref<128x36xf32, #tpu.memory_space<vmem>>, vector<128x4xf32>
    tpu.vector_store %arg6[%c0_7, %c4], %10 {strides = array<i32>} : memref<128x36xf32, #tpu.memory_space<vmem>>, vector<128x4xf32>,
    %12 = vector.extract_strided_slice %5 {offsets = [0, 0, 2, 0], sizes = [1, 8, 16, 4], strides = [1, 1, 1, 1]} : vector<1x10x18x4xf32> to vector<1x8x16x4xf32>
    %13 = vector.shape_cast %12 : vector<1x8x16x4xf32> to vector<128x4xf32>
    %c0_8 = arith.constant 0 : index
    %c8 = arith.constant 8 : index
    %14 = vector.load %arg6[%c0_8, %c8] : memref<128x36xf32, #tpu.memory_space<vmem>>, vector<128x4xf32>
    tpu.vector_store %arg6[%c0_8, %c8], %13 {strides = array<i32>} : memref<128x36xf32, #tpu.memory_space<vmem>>, vector<128x4xf32>,
    %15 = vector.extract_strided_slice %5 {offsets = [0, 1, 0, 0], sizes = [1, 8, 16, 4], strides = [1, 1, 1, 1]} : vector<1x10x18x4xf32> to vector<1x8x16x4xf32>
    %16 = vector.shape_cast %15 : vector<1x8x16x4xf32> to vector<128x4xf32>
    %c0_9 = arith.constant 0 : index
    %c12 = arith.constant 12 : index
    %17 = vector.load %arg6[%c0_9, %c12] : memref<128x36xf32, #tpu.memory_space<vmem>>, vector<128x4xf32>
    tpu.vector_store %arg6[%c0_9, %c12], %16 {strides = array<i32>} : memref<128x36xf32, #tpu.memory_space<vmem>>, vector<128x4xf32>,
    %18 = vector.extract_strided_slice %5 {offsets = [0, 1, 1, 0], sizes = [1, 8, 16, 4], strides = [1, 1, 1, 1]} : vector<1x10x18x4xf32> to vector<1x8x16x4xf32>
    %19 = vector.shape_cast %18 : vector<1x8x16x4xf32> to vector<128x4xf32>
    %c0_10 = arith.constant 0 : index
    %c16 = arith.constant 16 : index
    %20 = vector.load %arg6[%c0_10, %c16] : memref<128x36xf32, #tpu.memory_space<vmem>>, vector<128x4xf32>
    tpu.vector_store %arg6[%c0_10, %c16], %19 {strides = array<i32>} : memref<128x36xf32, #tpu.memory_space<vmem>>, vector<128x4xf32>,
    %21 = vector.extract_strided_slice %5 {offsets = [0, 1, 2, 0], sizes = [1, 8, 16, 4], strides = [1, 1, 1, 1]} : vector<1x10x18x4xf32> to vector<1x8x16x4xf32>
    %22 = vector.shape_cast %21 : vector<1x8x16x4xf32> to vector<128x4xf32>
    %c0_11 = arith.constant 0 : index
    %c20 = arith.constant 20 : index
    %23 = vector.load %arg6[%c0_11, %c20] : memref<128x36xf32, #tpu.memory_space<vmem>>, vector<128x4xf32>
    tpu.vector_store %arg6[%c0_11, %c20], %22 {strides = array<i32>} : memref<128x36xf32, #tpu.memory_space<vmem>>, vector<128x4xf32>,
    %24 = vector.extract_strided_slice %5 {offsets = [0, 2, 0, 0], sizes = [1, 8, 16, 4], strides = [1, 1, 1, 1]} : vector<1x10x18x4xf32> to vector<1x8x16x4xf32>
    %25 = vector.shape_cast %24 : vector<1x8x16x4xf32> to vector<128x4xf32>
    %c0_12 = arith.constant 0 : index
    %c24 = arith.constant 24 : index
    %26 = vector.load %arg6[%c0_12, %c24] : memref<128x36xf32, #tpu.memory_space<vmem>>, vector<128x4xf32>
    tpu.vector_store %arg6[%c0_12, %c24], %25 {strides = array<i32>} : memref<128x36xf32, #tpu.memory_space<vmem>>, vector<128x4xf32>,
    %27 = vector.extract_strided_slice %5 {offsets = [0, 2, 1, 0], sizes = [1, 8, 16, 4], strides = [1, 1, 1, 1]} : vector<1x10x18x4xf32> to vector<1x8x16x4xf32>
    %28 = vector.shape_cast %27 : vector<1x8x16x4xf32> to vector<128x4xf32>
    %c0_13 = arith.constant 0 : index
    %c28 = arith.constant 28 : index
    %29 = vector.load %arg6[%c0_13, %c28] : memref<128x36xf32, #tpu.memory_space<vmem>>, vector<128x4xf32>
    tpu.vector_store %arg6[%c0_13, %c28], %28 {strides = array<i32>} : memref<128x36xf32, #tpu.memory_space<vmem>>, vector<128x4xf32>,
    %30 = vector.extract_strided_slice %5 {offsets = [0, 2, 2, 0], sizes = [1, 8, 16, 4], strides = [1, 1, 1, 1]} : vector<1x10x18x4xf32> to vector<1x8x16x4xf32>
    %31 = vector.shape_cast %30 : vector<1x8x16x4xf32> to vector<128x4xf32>
    %c0_14 = arith.constant 0 : index
    %c32 = arith.constant 32 : index
    %32 = vector.load %arg6[%c0_14, %c32] : memref<128x36xf32, #tpu.memory_space<vmem>>, vector<128x4xf32>
    tpu.vector_store %arg6[%c0_14, %c32], %31 {strides = array<i32>} : memref<128x36xf32, #tpu.memory_space<vmem>>, vector<128x4xf32>,
    %c0_15 = arith.constant 0 : index
    %c0_16 = arith.constant 0 : index
    %33 = vector.load %arg6[%c0_15, %c0_16] : memref<128x36xf32, #tpu.memory_space<vmem>>, vector<128x36xf32>
    %34 = arith.truncf %33 : vector<128x36xf32> to vector<128x36xbf16>
    %c0_17 = arith.constant 0 : index
    %c0_18 = arith.constant 0 : index
    %35 = vector.load %arg3[%c0_17, %c0_18] : memref<36x128xbf16, #tpu.memory_space<vmem>>, vector<36x128xbf16>
    %cst = arith.constant dense<0.000000e+00> : vector<128x128xf32>
    %36 = tpu.matmul %34, %35, %cst {dimension_numbers = #tpu.dot_dimension_numbers<[1], [0], [0], [1], [0, 0, 1, 1], [], []>} : vector<128x36xbf16>, vector<36x128xbf16>, vector<128x128xf32> -> vector<128x128xf32>
    %c0_19 = arith.constant 0 : index
    %c0_20 = arith.constant 0 : index
    %37 = vector.load %arg4[%c0_19, %c0_20] : memref<1x128xf32, #tpu.memory_space<vmem>>, vector<1x128xf32>
    %38 = vector.broadcast %37 : vector<1x128xf32> to vector<128x128xf32>
    %39 = arith.addf %36, %38 : vector<128x128xf32>
    %cst_21 = arith.constant 0.000000e+00 : f32
    %40 = vector.broadcast %cst_21 : f32 to vector<128x128xf32>
    %41 = arith.maximumf %39, %40 : vector<128x128xf32>
    %c0_22 = arith.constant 0 : index
    %c0_23 = arith.constant 0 : index
    %c0_24 = arith.constant 0 : index
    %42 = vector.load %arg5[%c0_22, %c0_23, %c0_24] : memref<1x1x128xf32, #tpu.memory_space<vmem>>, vector<1x1x128xf32>
    %43 = vector.shape_cast %42 : vector<1x1x128xf32> to vector<1x128xf32>
    %44 = vector.shape_cast %41 : vector<128x128xf32> to vector<1x128x128xf32>
    %cst_25 = arith.constant dense<0.000000e+00> : vector<1x128xf32>
    %45 = vector.multi_reduction <add>, %44, %cst_25 [1] : vector<1x128x128xf32> to vector<1x128xf32>
    %46 = arith.addf %43, %45 : vector<1x128xf32>
    %c0_26 = arith.constant 0 : index
    %c0_27 = arith.constant 0 : index
    %c0_28 = arith.constant 0 : index
    %47 = vector.load %arg5[%c0_26, %c0_27, %c0_28] : memref<1x1x128xf32, #tpu.memory_space<vmem>>, vector<1x1x128xf32>
    %48 = vector.shape_cast %47 : vector<1x1x128xf32> to vector<1x128xf32>
    %49 = vector.shape_cast %46 : vector<1x128xf32> to vector<1x1x128xf32>
    tpu.vector_store %arg5[%c0_26, %c0_27, %c0_28], %49 {strides = array<i32>} : memref<1x1x128xf32, #tpu.memory_space<vmem>>, vector<1x1x128xf32>,
    %c1_i32 = arith.constant 1 : i32
    %50 = arith.cmpi eq, %arg1, %c1_i32 : i32
    %51 = arith.extui %50 : i1 to i32
    %c0_i32_29 = arith.constant 0 : i32
    %52 = arith.cmpi ne, %51, %c0_i32_29 : i32
    scf.if %52 {
      %c0_30 = arith.constant 0 : index
      %c0_31 = arith.constant 0 : index
      %c0_32 = arith.constant 0 : index
      %53 = vector.load %arg5[%c0_30, %c0_31, %c0_32] : memref<1x1x128xf32, #tpu.memory_space<vmem>>, vector<1x1x128xf32>
      %54 = vector.shape_cast %53 : vector<1x1x128xf32> to vector<1x128xf32>
      %cst_33 = arith.constant 3.906250e-03 : f32
      %55 = vector.broadcast %cst_33 : f32 to vector<1x128xf32>
      %56 = arith.mulf %54, %55 : vector<1x128xf32>
      %c0_34 = arith.constant 0 : index
      %c0_35 = arith.constant 0 : index
      %c0_36 = arith.constant 0 : index
      %57 = vector.load %arg5[%c0_34, %c0_35, %c0_36] : memref<1x1x128xf32, #tpu.memory_space<vmem>>, vector<1x1x128xf32>
      %58 = vector.shape_cast %57 : vector<1x1x128xf32> to vector<1x128xf32>
      %59 = vector.shape_cast %56 : vector<1x128xf32> to vector<1x1x128xf32>
      tpu.vector_store %arg5[%c0_34, %c0_35, %c0_36], %59 {strides = array<i32>} : memref<1x1x128xf32, #tpu.memory_space<vmem>>, vector<1x1x128xf32>,
    } else {
    }
    return
  }
  func.func @transform_0(%arg0: i32, %arg1: i32) -> (i32, i32, i32, i32, i32) {
    %c0_i32 = arith.constant 0 : i32
    %c0_i32_0 = arith.constant 0 : i32
    %c0_i32_1 = arith.constant 0 : i32
    %c0_i32_2 = arith.constant 0 : i32
    return %arg0, %arg1, %c0_i32, %c0_i32_0, %c0_i32_1 : i32, i32, i32, i32, i32
  }
  func.func @transform_1(%arg0: i32, %arg1: i32) -> (i32, i32) {
    %c0_i32 = arith.constant 0 : i32
    %c0_i32_0 = arith.constant 0 : i32
    %c0_i32_1 = arith.constant 0 : i32
    return %c0_i32, %c0_i32_0 : i32, i32
  }
  func.func @transform_2(%arg0: i32, %arg1: i32) -> (i32, i32) {
    %c0_i32 = arith.constant 0 : i32
    %c0_i32_0 = arith.constant 0 : i32
    %c0_i32_1 = arith.constant 0 : i32
    return %c0_i32, %c0_i32_0 : i32, i32
  }
  func.func @transform_3(%arg0: i32, %arg1: i32) -> (i32, i32, i32) {
    %c0_i32 = arith.constant 0 : i32
    %c0_i32_0 = arith.constant 0 : i32
    %c0_i32_1 = arith.constant 0 : i32
    return %arg0, %c0_i32, %c0_i32_0 : i32, i32, i32
  }
}

</mosaic_0001>

<bundles_post_ra>
// kernel: tpu_custom_call.1
= control target key start
LH: loop header
LB: loop body
LE: loop exit
PB: predicated region body
PF: predicated region fallthrough
CT: control target
= control target key end

     0   :  { %8 = vsyncpa [#allocation4], 0  ;;  %s2436_s0 = inlined_call_operand.vmem [shape: bf16[2,2,10,18,4], index: 0, kind: input, shape index: {}]   ;;  %s2437_s1 = inlined_call_operand.vmem [shape: bf16[36,128], index: 1, kind: input, shape index: {}]   ;;  %s2438_s2 = inlined_call_operand.vmem [shape: f32[1,128], index: 2, kind: input, shape index: {}]   ;;  %s2439_s3 = inlined_call_operand.hbm [shape: f32[2,1,128], index: 3, kind: output, shape index: {}]  }
   0x1   :  { %10 = vsyncpa [#allocation4 + $0x1], 0  ;;  %s1779_s12 = smov 0   ;;  %s1781_s13 = smov 0  }
   0x2   :  { %s1783_s14 = smov 0   ;;  %s1785_s15 = smov 0  }
   0x3   :  { %s1787_s16 = smov 0   ;;  %s1789_s17 = smov 0  }
   0x4   :  { %s1791_s18 = smov 0   ;;  %s1793_s19 = smov 0  }
   0x5 LB: > { %s1190_s20 = sadd.s32 4294967295, %s1748_s19   ;;  %s1191_s21 = sadd.s32 4294967294, %s1748_s19   ;;  %s1748_s19 = sphi %s1793_s19, %s16_s19   ;;  %s1744_s18 = sphi %s1791_s18, %s2448_s18   ;;  %s1740_s17 = sphi %s1789_s17, %s2447_s17   ;;  %s1736_s16 = sphi %s1787_s16, %s2446_s16   ;;  %s1732_s15 = sphi %s1785_s15, %s2445_s15   ;;  %s1728_s14 = sphi %s1783_s14, %s2444_s14   ;;  %s1724_s13 = sphi %s1781_s13, %s2443_s13   ;;  %s1720_s12 = sphi %s1779_s12, %s2442_s12  }
   0x6   : > { %s25_s22 = sadd.s32 1, %s1740_s17  ;;  %s28_s23 = sadd.s32 1, %s1744_s18 }
   0x7   : > { %p26_p0 = scmp.ge.s32.totalorder %s25_s22, 2  ;;  %p115_p1 = scmp.ne.s32.totalorder %s1728_s14, %s1724_s13 }
   0x8   : > { %p116_p2 = scmp.eq.s32.totalorder %s1190_s20, 3  ;;  %p121_p4 = scmp.ne.s32.totalorder %s1724_s13, %s1720_s12 }
   0x9   : > { %s2450_s22 = smov (%p26_p0, %s25_s22), 0  ;;  %s2452_s23 = smov (!%p26_p0, %s28_s23), %s1744_s18 }
   0xa   : > { %p1828_p3 = por %p116_p2, %p115_p1  ;;  %p30_p5 = scmp.ge.s32.totalorder %s2452_s23, 2 }
   0xb   : > { %p122_p6 = scmp.eq.s32.totalorder %s1191_s21, 3  ;;  %p1194_p7 = scmp.ge.s32.totalorder %s1748_s19, 1 }
   0xc   : > { %p158_p8 = scmp.lt.s32.totalorder %s1748_s19, 5  ;;  %s2454_s23 = smov (%p30_p5, %s2452_s23), 0 }
   0xd   : > { %p1838_p9 = por %p122_p6, %p121_p4  ;;  %s102_s26 = ssub.s32 %s1744_s18, %s2454_s23 }
   0xe   : > { %p159_p10 = pnand %p1194_p7, %p158_p8  ;;  %s105_s27 = sadd.s32 1, %s1728_s14 }
   0xf   : > { %p103_p11 = scmp.eq.s32.totalorder %s102_s26, 0  ;;  %s183_s29 = sand.u32 (!%p159_p10), 1, %s1724_s13  }
  0x10   : > { %162 = sbr.rel (%p159_p10) target bundleno = 522 (0x20a), region = 32  ;;  %p185_p12 = scmp.lt.s32.totalorder (!%p159_p10), %s1736_s16, 1 }
  0x11   : > { %s1846_s28 = scalar_select %p103_p11, %s1728_s14, %s105_s27  }
  0x12   : > { %p187_p13 = scmp.lt.s32.totalorder (!%p159_p10), %s1732_s15, 1  ;;  %s1860_s20 = scalar_lea.vmem (!%p159_p10), [#allocation3], %s183_s29 }
  0x13   : > { %p1196_p0 = scmp.ne.s32.totalorder (!%p159_p10), %s1732_s15, 0 }
  0x15   : > { %s186_s30 = scalar_select %p185_p12, %s1736_s16, 1 }
  0x16   : > { %s188_s4 = scalar_select %p187_p13, %s1732_s15, 1 }
  0x17   : > { %s1252_s5 = smul.u32 60, %s186_s30 }
  0x18   : > { %s1251_s6 = smul.u32 30, %s188_s4 }
  0x19   : > { %198 = sbr.rel (%p1196_p0) target bundleno = 32 (0x20), region = 36 }
  0x1a   : > { %s191_s7 = sadd.s32 %s1252_s5, %s1251_s6 }
  0x1b   : > { %s1195_s8 = sshll.u32 %s191_s7, 2 }
  0x1c   : > { %s1856_s11 = scalar_lea.vmem %s2436_s0, %s1195_s8 }
  0x1e   : > { %v1750_v0 = vmov 0.0  }
  0x1f   : > { %199 = vst [vmem:[%s1860_s20] sm:$0x1] %v1750_v0 }
  0x20 PF: > { %v1238_v1 = vld [vmem:[%s1856_s11 + $0x18] sm:$0xff]   ;;  %v1866_v2 = vld [vmem:[%s1856_s11 + $0x20] sm:$0x1]  ;;  %vm301_vm0 = vcmask 1046528   ;;  %v1877_v8 = vld [vmem:[%s1856_s11 + $0x8] sm:$0x1] }
  0x21   : > { %v1219_v3 = vld [vmem:[%s1856_s11] sm:$0xff]   ;;  %v1869_v4 = vunpack.c.l.bf16 %v1238_v1  ;;  %v1871_v5 = vunpack.c.h.bf16 %v1238_v1  ;;  %v238_v6 = vunpack.c.l.bf16 %v1866_v2  ;;  %v1881_v10 = vld [vmem:[%s1856_s11 + $0x2c] sm:$0x1]  ;;  %v232_v12 = vunpack.c.l.bf16 %v1877_v8  ;;  %v1902_v24 = vld [vmem:[%s1856_s11 + $0x14] sm:$0x1]  ;;  %s1751_s21 = smov 4  }
  0x22   : > { %v1874_v7 = vunpack.c.l.bf16 %v1219_v3  ;;  %v209_v9 = vld [vmem:[%s1856_s11 + $0x24] sm:$0xff]   ;;  %v1883_v11 = vunpack.c.h.bf16 %v1219_v3  ;;  %v203_v15 = vld [vmem:[%s1856_s11 + $0xc] sm:$0xff]   ;;  %v241_v22 = vunpack.c.l.bf16 %v1881_v10  ;;  %v221_v29 = vld [vmem:[%s1856_s11 + $0x54] sm:$0xff]   ;;  %v235_v37 = vunpack.c.l.bf16 %v1902_v24  ;;  %s1752_s26 = smov 8   ;;  %s1753_s27 = smov 12  }
  0x23   : > { %v1886_v13 = vunpack.c.l.bf16 %v209_v9  ;;  %v1888_v14 = vunpack.c.h.bf16 %v209_v9  ;;  %v312_v16 = vrot.slane %v1869_v4, 1  ;;  %v313_v17 = vrot.slane %v1871_v5, 1  ;;  %v1917_v34 = vld [vmem:[%s1856_s11 + $0x5c] sm:$0x1]  ;;  %v1240_v38 = vld [vmem:[%s1856_s11 + $0x48] sm:$0xff]   ;;  %v1239_v60 = vld [vmem:[%s1856_s11 + $0x30] sm:$0xff]  }
  0x24   : > { %v315_v18 = vrot.slane %v238_v6, 1  ;;  %v302_v19 = vrot.slane %v1874_v7, 1  ;;  %v303_v20 = vrot.slane %v1883_v11, 1  ;;  %v305_v21 = vrot.slane %v232_v12, 1  ;;  %v1932_v43 = vld [vmem:[%s1856_s11 + $0x50] sm:$0x1] }
  0x25   : > { %v317_v23 = vrot.slane %v1886_v13, 1  ;;  %v314_v25 = vsel %vm301_vm0, %v312_v16, %v313_v17  ;;  %v318_v27 = vrot.slane %v1888_v14, 1  ;;  %v1907_v28 = vunpack.c.l.bf16 %v203_v15  ;;  %v214_v62 = vld [vmem:[%s1856_s11 + $0x38] sm:$0x1]  ;;  %v215_v63 = vld [vmem:[%s1856_s11 + $0x3c] sm:$0xff]   ;;  %s1754_s30 = smov 24  }
  0x26   : > { %v316_v26 = vsel %vm301_vm0, %v313_v17, %v315_v18  ;;  %v304_v31 = vsel %vm301_vm0, %v302_v19, %v303_v20  ;;  %v306_v32 = vsel %vm301_vm0, %v303_v20, %v305_v21  ;;  %v320_v33 = vrot.slane %v241_v22, 1  ;;  %v217_v17 = vld [vmem:[%s1856_s11 + $0x44] sm:$0x1]  ;;  %s1755_s4 = smov 20   ;;  %s1756_s5 = smov 16  }
  0x27   : > { %v1910_v30 = vpack.i.bf16 %v316_v26, %v314_v25  ;;  %v1333_v35 = vpack.i.bf16 %v306_v32, %v304_v31  ;;  %v1919_v36 = vunpack.c.h.bf16 %v203_v15  ;;  %v319_v39 = vsel %vm301_vm0, %v317_v23, %v318_v27  ;;  %s1757_s6 = smov 32   ;;  %s1758_s7 = smov 28  }
  0x28   : > { %v307_v40 = vrot.slane %v1907_v28, 1  ;;  %v1927_v41 = vunpack.c.l.bf16 %v221_v29  ;;  %v1929_v42 = vunpack.c.h.bf16 %v221_v29  ;;  %v321_v44 = vsel %vm301_vm0, %v318_v27, %v320_v33  ;;  %p1213_p1 = scmp.ne.s32.totalorder %s1732_s15, 1 }
  0x29   : > { %1344 = vrot.lane.b32.xlu1 %v1910_v30, %s1751_s21  ;;  %1334 = vrot.lane.b32.xlu0 %v1333_v35, %s1751_s21  ;;  %v308_v45 = vrot.slane %v1919_v36, 1  ;;  %v310_v46 = vrot.slane %v235_v37, 1  ;;  %v253_v47 = vunpack.c.l.bf16 %v1917_v34  ;;  %v1938_v48 = vunpack.c.l.bf16 %v1240_v38 }
  0x2a   : > { %v1940_v49 = vunpack.c.h.bf16 %v1240_v38  ;;  %v250_v52 = vunpack.c.l.bf16 %v1932_v43  ;;  %v1945_v53 = vpack.i.bf16 %v321_v44, %v319_v39  ;;  %v337_v54 = vrot.slane %v1927_v41, 1 }
  0x2b   : > { %v309_v50 = vsel %vm301_vm0, %v307_v40, %v308_v45  ;;  %v311_v51 = vsel %vm301_vm0, %v308_v45, %v310_v46  ;;  %v338_v55 = vrot.slane %v1929_v42, 1  ;;  %v340_v56 = vrot.slane %v253_v47, 1 }
  0x2c   : > { %v1951_v57 = vpack.i.bf16 %v311_v51, %v309_v50  ;;  %v332_v58 = vrot.slane %v1938_v48, 1  ;;  %v333_v59 = vrot.slane %v1940_v49, 1  ;;  %v335_v61 = vrot.slane %v250_v52, 1 }
  0x2d   : > { %v339_v0 = vsel %vm301_vm0, %v337_v54, %v338_v55  ;;  %v341_v1 = vsel %vm301_vm0, %v338_v55, %v340_v56  ;;  %v1964_v3 = vunpack.c.l.bf16 %v1239_v60  ;;  %vm407_vm1 = vcmask 1045504  }
  0x2e   : > { %v334_v9 = vsel %vm301_vm0, %v332_v58, %v333_v59  ;;  %v418_v15 = vrot.slane %v1869_v4, 2  ;;  %v1970_v16 = vunpack.c.h.bf16 %v1239_v60  ;;  %v336_v18 = vsel %vm301_vm0, %v333_v59, %v335_v61 }
  0x2f   : > { %v244_v19 = vunpack.c.l.bf16 %v214_v62  ;;  %v322_v20 = vrot.slane %v1964_v3, 1  ;;  %v1975_v21 = vunpack.c.l.bf16 %v215_v63  ;;  %v1977_v23 = vpack.i.bf16 %v341_v1, %v339_v0 }
  0x30   : > { %v419_v24 = vrot.slane %v1871_v5, 2  ;;  %v323_v25 = vrot.slane %v1970_v16, 1  ;;  %v1981_v26 = vunpack.c.h.bf16 %v215_v63  ;;  %v421_v27 = vrot.slane %v238_v6, 2 }
  0x31   : > { %1349 = vrot.lane.b32.xlu1 %v1945_v53, %s1751_s21  ;;  %1339 = vrot.lane.b32.xlu0 %v1951_v57, %s1751_s21  ;;  %v413_v29 = vrot.slane %v1907_v28, 2  ;;  %v325_v31 = vrot.slane %v244_v19, 1  ;;  %v247_v32 = vunpack.c.l.bf16 %v217_v17  ;;  %v1986_v33 = vpack.i.bf16 %v336_v18, %v334_v9 }
  0x32   : > { %v414_v35 = vrot.slane %v1919_v36, 2  ;;  %v416_v38 = vrot.slane %v235_v37, 2  ;;  %v324_v39 = vsel %vm301_vm0, %v322_v20, %v323_v25  ;;  %v327_v44 = vrot.slane %v1975_v21, 1 }
  0x33   : > { %v326_v40 = vsel %vm301_vm0, %v323_v25, %v325_v31  ;;  %v328_v45 = vrot.slane %v1981_v26, 1  ;;  %v420_v2 = vsel %vm407_vm1, %v418_v15, %v419_v24  ;;  %v330_v6 = vrot.slane %v247_v32, 1 }
  0x34   : > { %v1993_v46 = vpack.i.bf16 %v326_v40, %v324_v39  ;;  %v422_v37 = vsel %vm407_vm1, %v419_v24, %v421_v27  ;;  %v415_v50 = vsel %vm407_vm1, %v413_v29, %v414_v35  ;;  %v417_v51 = vsel %vm407_vm1, %v414_v35, %v416_v38 }
  0x35   : > { %v329_v54 = vsel %vm301_vm0, %v327_v44, %v328_v45  ;;  %v331_v55 = vsel %vm301_vm0, %v328_v45, %v330_v6  ;;  %v2007_v56 = vpack.i.bf16 %v422_v37, %v420_v2  ;;  %v2009_v58 = vpack.i.bf16 %v417_v51, %v415_v50 }
  0x36   : > { %1354 = vrot.lane.b32.xlu2 %v1993_v46, %s1751_s21  ;;  %v433_v59 = vrot.slane %v1975_v21, 2  ;;  %v428_v60 = vrot.slane %v1964_v3, 2  ;;  %v434_v61 = vrot.slane %v1981_v26, 2  ;;  %v436_v62 = vrot.slane %v247_v32, 2 }
  0x37   : > { %v429_v63 = vrot.slane %v1970_v16, 2  ;;  %v2015_v0 = vpack.i.bf16 %v331_v55, %v329_v54  ;;  %v431_v1 = vrot.slane %v244_v19, 2  ;;  %v408_v9 = vrot.slane %v1874_v7, 2 }
  0x38   : > { %v409_v15 = vrot.slane %v1883_v11, 2  ;;  %v411_v17 = vrot.slane %v232_v12, 2  ;;  %v435_v18 = vsel %vm407_vm1, %v433_v59, %v434_v61  ;;  %v437_v20 = vsel %vm407_vm1, %v434_v61, %v436_v62 }
  0x39   : > { %1369 = vrot.lane.b32.xlu1 %v1977_v23, %s1751_s21  ;;  %1364 = vrot.lane.b32.xlu0 %v1986_v33, %s1751_s21  ;;  %v430_v19 = vsel %vm407_vm1, %v428_v60, %v429_v63  ;;  %v432_v24 = vsel %vm407_vm1, %v429_v63, %v431_v1  ;;  %v2033_v25 = vpack.i.bf16 %v437_v20, %v435_v18  ;;  %v443_v29 = vrot.slane %v1927_v41, 2 }
  0x3a   : > { %v410_v8 = vsel %vm407_vm1, %v408_v9, %v409_v15  ;;  %v412_v12 = vsel %vm407_vm1, %v409_v15, %v411_v17  ;;  %v2035_v27 = vpack.i.bf16 %v432_v24, %v430_v19  ;;  %v444_v31 = vrot.slane %v1929_v42, 2 }
  0x3b   : > { %v1373_v32 = vpack.i.bf16 %v412_v12, %v410_v8  ;;  %v446_v35 = vrot.slane %v253_v47, 2  ;;  %v423_v38 = vrot.slane %v1886_v13, 2  ;;  %v424_v39 = vrot.slane %v1888_v14, 2 }
  0x3c   : > { %v426_v40 = vrot.slane %v241_v22, 2  ;;  %v445_v44 = vsel %vm407_vm1, %v443_v29, %v444_v31  ;;  %v1413_v10 = vpack.i.bf16 %v1919_v36, %v1907_v28  ;;  %v438_v6 = vrot.slane %v1938_v48, 2 }
  0x3d   : > { %v447_v34 = vsel %vm407_vm1, %v444_v31, %v446_v35  ;;  %v425_v47 = vsel %vm407_vm1, %v423_v38, %v424_v39  ;;  %v439_v37 = vrot.slane %v1940_v49, 2  ;;  %v441_v50 = vrot.slane %v250_v52, 2 }
  0x3e   : > { %1359 = vrot.lane.b32.xlu2 %v2015_v0, %s1751_s21  ;;  %v427_v45 = vsel %vm407_vm1, %v424_v39, %v426_v40  ;;  %v2056_v22 = vpack.i.bf16 %v447_v34, %v445_v44  ;;  %v1428_v55 = vpack.i.bf16 %v1970_v16, %v1964_v3  ;;  %v2075_v43 = vpack.i.bf16 %v1888_v14, %v1886_v13 }
  0x3f   : > { %v2058_v2 = vpack.i.bf16 %v427_v45, %v425_v47  ;;  %v440_v51 = vsel %vm407_vm1, %v438_v6, %v439_v37  ;;  %v442_v54 = vsel %vm407_vm1, %v439_v37, %v441_v50  ;;  %v2086_v59 = vpack.i.bf16 %v1929_v42, %v1927_v41 }
  0x40   : > { %v2077_v52 = vpack.i.bf16 %v442_v54, %v440_v51  ;;  %v1438_v60 = vpack.i.bf16 %v1940_v49, %v1938_v48  ;;  %v1418_v61 = vpack.i.bf16 %v1871_v5, %v1869_v4  ;;  %v2098_v62 = vpack.i.bf16 %v1981_v26, %v1975_v21 }
  0x41   : > { %1384 = vrot.lane.b32.xlu1 %v2007_v56, %s1752_s26  ;;  %1379 = vrot.lane.b32.xlu0 %v2009_v58, %s1752_s26  ;;  %vm260_vm2 = vcmask 31744   ;;  %vm390_vm3 = vcmask 64544   ;;  %vm496_vm4 = vcmask 97344   ;;  %vm563_vm5 = vcmask 130144  }
  0x42   : > { %266 = vst.msk [vmem:[#allocation2 + $0x28] sm:$0xff] %vm260_vm2, %v1871_v5  ;;  %v226_v5 = vld [vmem:[%s1856_s11 + $0x68] sm:$0x1]  ;;  %vm1002_vm6 = vcmask 1041408   ;;  %vm634_vm7 = vcmask 162944   ;;  %vm704_vm8 = vcmask 195744  }
  0x43   : > { %265 = vst.msk [vmem:[#allocation2 + $0x20] sm:$0xff] %vm260_vm2, %v1869_v4  ;;  %v1241_v4 = vld [vmem:[%s1856_s11 + $0x60] sm:$0xff]   ;;  %vm771_vm9 = vcmask 228544   ;;  %vm842_vm10 = vcmask 261344   ;;  %vm912_vm11 = vcmask 294144   ;;  %vm977_vm12 = vcmask 293888  }
  0x44   : > { %261 = vst.msk [vmem:[#allocation2] sm:$0xff] %vm260_vm2, %v1874_v7  ;;  %v1236_v7 = vunpack.c.l.bf16 %v1241_v4 }
  0x45   : > { %262 = vst.msk [vmem:[#allocation2 + $0x8] sm:$0xff] %vm260_vm2, %v1883_v11  ;;  %v1237_v11 = vunpack.c.h.bf16 %v1241_v4 }
  0x46   : > { %1374 = vrot.lane.b32.xlu2 %v1373_v32, %s1752_s26  ;;  %263 = vst.msk [vmem:[#allocation2 + $0x10] sm:$0xff] %vm260_vm2, %v1907_v28  ;;  %v651_v31 = vrot.slane %v1236_v7, 2 }
  0x47   : > { %264 = vst.msk [vmem:[#allocation2 + $0x18] sm:$0xff] %vm260_vm2, %v1919_v36  ;;  %v2192_v12 = vpack.i.bf16 %v1237_v11, %v1236_v7  ;;  %v652_v32 = vrot.slane %v1237_v11, 2 }
  0x48   : > { %267 = vst.msk [vmem:[#allocation2 + $0x30] sm:$0xff] %vm260_vm2, %v1886_v13  ;;  %v256_v13 = vunpack.c.l.bf16 %v226_v5 }
  0x49   : > { %1399 = vrot.lane.b32.xlu1 %v2033_v25, %s1752_s26  ;;  %1394 = vrot.lane.b32.xlu0 %v2035_v27, %s1752_s26  ;;  %268 = vst.msk [vmem:[#allocation2 + $0x38] sm:$0xff] %vm260_vm2, %v1888_v14  ;;  %v653_v39 = vsel %vm407_vm1, %v651_v31, %v652_v32 }
  0x4a   : > { %269 = vst.msk [vmem:[#allocation2 + $0x40] sm:$0xff] %vm260_vm2, %v1964_v3  ;;  %v654_v35 = vrot.slane %v256_v13, 2 }
  0x4b   : > { %270 = vst.msk [vmem:[#allocation2 + $0x48] sm:$0xff] %vm260_vm2, %v1970_v16 }
  0x4c   : > { %271 = vst.msk [vmem:[#allocation2 + $0x50] sm:$0xff] %vm260_vm2, %v1975_v21  ;;  %v655_v40 = vsel %vm407_vm1, %v652_v32, %v654_v35 }
  0x4d   : > { %272 = vst.msk [vmem:[#allocation2 + $0x58] sm:$0xff] %vm260_vm2, %v1981_v26 }
  0x4e   : > { %1389 = vrot.lane.b32.xlu2 %v2058_v2, %s1752_s26  ;;  %273 = vst.msk [vmem:[#allocation2 + $0x60] sm:$0xff] %vm260_vm2, %v1938_v48  ;;  %v584_v48 = vrot.slane %v256_v13, 1 }
  0x4f   : > { %274 = vst.msk [vmem:[#allocation2 + $0x68] sm:$0xff] %vm260_vm2, %v1940_v49 }
  0x50   : > { %275 = vst.msk [vmem:[#allocation2 + $0x70] sm:$0xff] %vm260_vm2, %v1927_v41  ;;  %v581_v41 = vrot.slane %v1236_v7, 1 }
  0x51   : > { %1414 = vrot.lane.b32.xlu1 %v1413_v10, %s1753_s27  ;;  %1409 = vrot.lane.b32.xlu0 %v2056_v22, %s1752_s26  ;;  %276 = vst.msk [vmem:[#allocation2 + $0x78] sm:$0xff] %vm260_vm2, %v1929_v42  ;;  %v582_v42 = vrot.slane %v1237_v11, 1 }
  0x53   : > { %v583_v49 = vsel %vm301_vm0, %v581_v41, %v582_v42 }
  0x56   : > { %1404 = vrot.lane.b32.xlu2 %v2077_v52, %s1752_s26 }
  0x59   : > { %1429 = vrot.lane.b32.xlu1 %v1428_v55, %s1753_s27  ;;  %1424 = vrot.lane.b32.xlu0 %v2075_v43, %s1753_s27 }
  0x5e   : > { %1419 = vrot.lane.b32.xlu2 %v1418_v61, %s1753_s27 }
  0x61   : > { %1444 = vrot.lane.b32.xlu1 %v2086_v59, %s1753_s27  ;;  %1439 = vrot.lane.b32.xlu0 %v1438_v60, %s1753_s27 }
  0x66   : > { %1434 = vrot.lane.b32.xlu2 %v2098_v62, %s1753_s27 }
  0x69   : > { %1459 = vrot.lane.b32.xlu1 %v1418_v61, %s1754_s30  ;;  %1454 = vrot.lane.b32.xlu0 %v2009_v58, %s1755_s4 }
  0x6e   : > { %1449 = vrot.lane.b32.xlu2 %v1951_v57, %s1756_s5  ;;  %v585_v57 = vsel %vm301_vm0, %v582_v42, %v584_v48  ;;  %v957_v42 = vld [vmem:[%s2437_s1 + $0x10] sm:$0x3] }
  0x6f   : > { %v2177_v1 = vpack.i.bf16 %v585_v57, %v583_v49  ;;  %v971_v57 = vunpack.c.l.b16 %v957_v42 }
  0x71   : > { %1474 = vrot.lane.b32.xlu1 %v1945_v53, %s1756_s5  ;;  %1469 = vrot.lane.b32.xlu0 %v2007_v56, %s1757_s6 }
  0x76   : > { %1464 = vrot.lane.b32.xlu2 %v1910_v30, %s1758_s7 }
  0x79   : > { %1489 = vrot.lane.b32.xlu1 %v1428_v55, %s1754_s30  ;;  %1484 = vrot.lane.b32.xlu0 %v2015_v0, %s1756_s5 }
  0x7e   : > { %1479 = vrot.lane.b32.xlu2 %v2058_v2, %s1755_s4 }
  0x81   : > { %1504 = vrot.lane.b32.xlu1 %v1438_v60, %s1754_s30  ;;  %1499 = vrot.lane.b32.xlu0 %v1993_v46, %s1758_s7 }
  0x86   : > { %1494 = vrot.lane.b32.xlu2 %v2033_v25, %s1755_s4 }
  0x89   : > { %1519 = vrot.lane.b32.xlu1 %v2077_v52, %s1757_s6  ;;  %1514 = vrot.lane.b32.xlu0 %v1986_v33, %s1758_s7 }
  0x8e   : > { %1509 = vrot.lane.b32.xlu2 %v2035_v27, %s1757_s6 }
  0x90   : > { %v1355_v14 = vpop.permute.xlu2 %1354 }
  0x91   : > { %1534 = vrot.lane.b32.xlu1 %v1977_v23, %s1756_s5  ;;  %1529 = vrot.lane.b32.xlu0 %v2007_v56, %s1755_s4  ;;  %v1357_v28 = vunpack.i.h.bf16 %v1355_v14  ;;  %v1356_v36 = vunpack.i.l.bf16 %v1355_v14 }
  0x93   : > { %400 = vst.msk [vmem:[#allocation2 + $0x48] sm:$0xff] %vm390_vm3, %v1357_v28  ;;  %v227_v28 = vld [vmem:[%s1856_s11 + $0x6c] sm:$0xff]  }
  0x94   : > { %399 = vst.msk [vmem:[#allocation2 + $0x40] sm:$0xff] %vm390_vm3, %v1356_v36  ;;  %v2241_v36 = vunpack.c.l.bf16 %v227_v28  ;;  %v2243_v41 = vunpack.c.h.bf16 %v227_v28 }
  0x96   : > { %1524 = vrot.lane.b32.xlu2 %v1910_v30, %s1756_s5 }
  0x98   : > { %v1360_v56 = vpop.permute.xlu2 %1359 }
  0x99   : > { %1549 = vrot.lane.b32.xlu1 %v1945_v53, %s1758_s7  ;;  %1544 = vrot.lane.b32.xlu0 %v2056_v22, %s1755_s4  ;;  %v1362_v53 = vunpack.i.h.bf16 %v1360_v56  ;;  %v1361_v9 = vunpack.i.l.bf16 %v1360_v56 }
  0x9b   : > { %v1345_v3 = vpop.permute.xlu1 %1344  ;;  %v1335_v26 = vpop.permute.xlu0 %1334  ;;  %402 = vst.msk [vmem:[#allocation2 + $0x58] sm:$0xff] %vm390_vm3, %v1362_v53 }
  0x9c   : > { %v1347_v16 = vunpack.i.h.bf16 %v1345_v3  ;;  %v1346_v21 = vunpack.i.l.bf16 %v1345_v3  ;;  %v1337_v58 = vunpack.i.h.bf16 %v1335_v26  ;;  %v1336_v63 = vunpack.i.l.bf16 %v1335_v26  ;;  %401 = vst.msk [vmem:[#allocation2 + $0x50] sm:$0xff] %vm390_vm3, %v1361_v9 }
  0x9d   : > { %v859_v9 = vrot.slane %v2241_v36, 2 }
  0x9e   : > { %396 = vst.msk [vmem:[#allocation2 + $0x28] sm:$0xff] %vm390_vm3, %v1347_v16  ;;  %1539 = vrot.lane.b32.xlu2 %v2075_v43, %s1754_s30 }
  0x9f   : > { %395 = vst.msk [vmem:[#allocation2 + $0x20] sm:$0xff] %vm390_vm3, %v1346_v21 }
  0xa0   : > { %392 = vst.msk [vmem:[#allocation2 + $0x8] sm:$0xff] %vm390_vm3, %v1337_v58  ;;  %v1375_v20 = vpop.permute.xlu2 %1374  ;;  %v1638_v58 = vpack.i.bf16 %v2243_v41, %v2241_v36 }
  0xa1   : > { %391 = vst.msk [vmem:[#allocation2] sm:$0xff] %vm390_vm3, %v1336_v63  ;;  %1564 = vrot.lane.b32.xlu1 %v2177_v1, %s1758_s7  ;;  %1559 = vrot.lane.b32.xlu0 %v2058_v2, %s1757_s6  ;;  %v1376_v8 = vunpack.i.l.bf16 %v1375_v20  ;;  %v1377_v29 = vunpack.i.h.bf16 %v1375_v20  ;;  %v2208_v2 = vpack.i.bf16 %v655_v40, %v653_v39  ;;  %v974_v63 = vpack.c.b16 %v971_v57, %v971_v57  ;;  %v1216_v39 = vld [vmem:[%s2437_s1] sm:$0xff] }
  0xa3   : > { %v1350_v30 = vpop.permute.xlu1 %1349  ;;  %v1340_v18 = vpop.permute.xlu0 %1339  ;;  %497 = vst.msk [vmem:[#allocation2] sm:$0xff] %vm496_vm4, %v1376_v8 }
  0xa4   : > { %v1352_v15 = vunpack.i.h.bf16 %v1350_v30  ;;  %v1351_v17 = vunpack.i.l.bf16 %v1350_v30  ;;  %v1342_v19 = vunpack.i.h.bf16 %v1340_v18  ;;  %v1341_v24 = vunpack.i.l.bf16 %v1340_v18  ;;  %498 = vst.msk [vmem:[#allocation2 + $0x8] sm:$0xff] %vm496_vm4, %v1377_v29  ;;  %v1217_v18 = vld [vmem:[%s2437_s1 + $0x8] sm:$0xff] }
  0xa5   : > { %v860_v30 = vrot.slane %v2243_v41, 2 }
  0xa6   : > { %398 = vst.msk [vmem:[#allocation2 + $0x38] sm:$0xff] %vm390_vm3, %v1352_v15  ;;  %1554 = vrot.lane.b32.xlu2 %v2192_v12, %s1754_s30 }
  0xa7   : > { %397 = vst.msk [vmem:[#allocation2 + $0x30] sm:$0xff] %vm390_vm3, %v1351_v17  ;;  %v1004_v17 = vsel %vm1002_vm6, %v974_v63, 0 }
  0xa8   : > { %394 = vst.msk [vmem:[#allocation2 + $0x18] sm:$0xff] %vm390_vm3, %v1342_v19  ;;  %v1390_v45 = vpop.permute.xlu2 %1389  ;;  %1011 = vmatpush.bf16.msra.mxu0 %v1004_v17  ;;  %v861_v19 = vsel %vm407_vm1, %v859_v9, %v860_v30  ;;  %1242 = vmatpush.bf16.msra.mxu1 %v1004_v17 }
  0xa9   : > { %393 = vst.msk [vmem:[#allocation2 + $0x10] sm:$0xff] %vm390_vm3, %v1341_v24  ;;  %1579 = vrot.lane.b32.xlu1 %v2035_v27, %s1755_s4  ;;  %1574 = vrot.lane.b32.xlu0 %v1993_v46, %s1756_s5  ;;  %v1392_v46 = vunpack.i.h.bf16 %v1390_v45  ;;  %v1391_v6 = vunpack.i.l.bf16 %v1390_v45 }
  0xaa   : > { %1243 = vmatpush.bf16.msra.mxu2 %v1004_v17  ;;  %1244 = vmatpush.bf16.msra.mxu3 %v1004_v17 }
  0xab   : > { %v1370_v38 = vpop.permute.xlu1 %1369  ;;  %v1365_v47 = vpop.permute.xlu0 %1364  ;;  %504 = vst.msk [vmem:[#allocation2 + $0x38] sm:$0xff] %vm496_vm4, %v1392_v46 }
  0xac   : > { %v1372_v44 = vunpack.i.h.bf16 %v1370_v38  ;;  %v1371_v34 = vunpack.i.l.bf16 %v1370_v38  ;;  %v1367_v27 = vunpack.i.h.bf16 %v1365_v47  ;;  %v1366_v10 = vunpack.i.l.bf16 %v1365_v47  ;;  %503 = vst.msk [vmem:[#allocation2 + $0x30] sm:$0xff] %vm496_vm4, %v1391_v6  ;;  %1012 = vmatpush.bf16.msra.mxu0 %v1217_v18  ;;  %1245 = vmatpush.bf16.msra.mxu1 %v1217_v18 }
  0xae   : > { %406 = vst.msk [vmem:[#allocation2 + $0x78] sm:$0xff] %vm390_vm3, %v1372_v44  ;;  %1569 = vrot.lane.b32.xlu2 %v2208_v2, %s1757_s6  ;;  %v789_v44 = vrot.slane %v2241_v36, 1  ;;  %1246 = vmatpush.bf16.msra.mxu2 %v1217_v18 }
  0xaf   : > { %405 = vst.msk [vmem:[#allocation2 + $0x70] sm:$0xff] %vm390_vm3, %v1371_v34  ;;  %v790_v34 = vrot.slane %v2243_v41, 1  ;;  %1247 = vmatpush.bf16.msra.mxu3 %v1217_v18 }
  0xb0   : > { %404 = vst.msk [vmem:[#allocation2 + $0x68] sm:$0xff] %vm390_vm3, %v1367_v27  ;;  %v1405_v55 = vpop.permute.xlu2 %1404  ;;  %1013 = vmatpush.bf16.msra.mxu0 %v1216_v39  ;;  %1248 = vmatpush.bf16.msra.mxu1 %v1216_v39 }
  0xb1   : > { %403 = vst.msk [vmem:[#allocation2 + $0x60] sm:$0xff] %vm390_vm3, %v1366_v10  ;;  %1594 = vrot.lane.b32.xlu1 %v2077_v52, %s1755_s4  ;;  %1589 = vrot.lane.b32.xlu0 %v2098_v62, %s1754_s30  ;;  %v1406_v52 = vunpack.i.l.bf16 %v1405_v55  ;;  %v1407_v61 = vunpack.i.h.bf16 %v1405_v55  ;;  %v791_v27 = vsel %vm301_vm0, %v789_v44, %v790_v34 }
  0xb2   : > { %1249 = vmatpush.bf16.msra.mxu2 %v1216_v39 }
  0xb3   : > { %v1385_v37 = vpop.permute.xlu1 %1384  ;;  %v1380_v54 = vpop.permute.xlu0 %1379  ;;  %509 = vst.msk [vmem:[#allocation2 + $0x60] sm:$0xff] %vm496_vm4, %v1406_v52  ;;  %1250 = vmatpush.bf16.msra.mxu3 %v1216_v39 }
  0xb4   : > { %v1387_v50 = vunpack.i.h.bf16 %v1385_v37  ;;  %v1386_v51 = vunpack.i.l.bf16 %v1385_v37  ;;  %v1382_v43 = vunpack.i.h.bf16 %v1380_v54  ;;  %v1381_v60 = vunpack.i.l.bf16 %v1380_v54  ;;  %510 = vst.msk [vmem:[#allocation2 + $0x68] sm:$0xff] %vm496_vm4, %v1407_v61 }
  0xb6   : > { %501 = vst.msk [vmem:[#allocation2 + $0x20] sm:$0xff] %vm496_vm4, %v1386_v51  ;;  %1584 = vrot.lane.b32.xlu2 %v1986_v33, %s1756_s5  ;;  %v229_v33 = vld [vmem:[%s1856_s11 + $0x74] sm:$0x1] }
  0xb7   : > { %502 = vst.msk [vmem:[#allocation2 + $0x28] sm:$0xff] %vm496_vm4, %v1387_v50  ;;  %v259_v49 = vunpack.c.l.bf16 %v229_v33 }
  0xb8   : > { %499 = vst.msk [vmem:[#allocation2 + $0x10] sm:$0xff] %vm496_vm4, %v1381_v60  ;;  %v1420_v11 = vpop.permute.xlu2 %1419 }
  0xb9   : > { %500 = vst.msk [vmem:[#allocation2 + $0x18] sm:$0xff] %vm496_vm4, %v1382_v43  ;;  %1609 = vrot.lane.b32.xlu1 %v2033_v25, %s1757_s6  ;;  %1604 = vrot.lane.b32.xlu0 %v2086_v59, %s1754_s30  ;;  %v1421_v25 = vunpack.i.l.bf16 %v1420_v11  ;;  %v1422_v59 = vunpack.i.h.bf16 %v1420_v11  ;;  %v862_v15 = vrot.slane %v259_v49, 2  ;;  %v792_v47 = vrot.slane %v259_v49, 1 }
  0xbb   : > { %v1400_v62 = vpop.permute.xlu1 %1399  ;;  %v1395_v7 = vpop.permute.xlu0 %1394  ;;  %566 = vst.msk [vmem:[#allocation2 + $0x10] sm:$0xff] %vm563_vm5, %v1421_v25  ;;  %v863_v24 = vsel %vm407_vm1, %v860_v30, %v862_v15  ;;  %v793_v10 = vsel %vm301_vm0, %v790_v34, %v792_v47 }
  0xbc   : > { %v1402_v4 = vunpack.i.h.bf16 %v1400_v62  ;;  %v1401_v5 = vunpack.i.l.bf16 %v1400_v62  ;;  %v1397_v13 = vunpack.i.h.bf16 %v1395_v7  ;;  %v1396_v14 = vunpack.i.l.bf16 %v1395_v7  ;;  %567 = vst.msk [vmem:[#allocation2 + $0x18] sm:$0xff] %vm563_vm5, %v1422_v59 }
  0xbd   : > { %v1648_v35 = vpack.i.bf16 %v863_v24, %v861_v19  ;;  %v1643_v54 = vpack.i.bf16 %v793_v10, %v791_v27 }
  0xbe   : > { %508 = vst.msk [vmem:[#allocation2 + $0x58] sm:$0xff] %vm496_vm4, %v1402_v4  ;;  %1599 = vrot.lane.b32.xlu2 %v2015_v0, %s1758_s7 }
  0xbf   : > { %507 = vst.msk [vmem:[#allocation2 + $0x50] sm:$0xff] %vm496_vm4, %v1401_v5 }
  0xc0   : > { %506 = vst.msk [vmem:[#allocation2 + $0x48] sm:$0xff] %vm496_vm4, %v1397_v13  ;;  %v1435_v26 = vpop.permute.xlu2 %1434 }
  0xc1   : > { %505 = vst.msk [vmem:[#allocation2 + $0x40] sm:$0xff] %vm496_vm4, %v1396_v14  ;;  %1624 = vrot.lane.b32.xlu1 %v2192_v12, %s1753_s27  ;;  %1619 = vrot.lane.b32.xlu0 %v2056_v22, %s1757_s6  ;;  %v1436_v0 = vunpack.i.l.bf16 %v1435_v26  ;;  %v1437_v53 = vunpack.i.h.bf16 %v1435_v26 }
  0xc3   : > { %v1415_v48 = vpop.permute.xlu1 %1414  ;;  %v1410_v21 = vpop.permute.xlu0 %1409  ;;  %572 = vst.msk [vmem:[#allocation2 + $0x40] sm:$0xff] %vm563_vm5, %v1436_v0 }
  0xc4   : > { %v1417_v3 = vunpack.i.h.bf16 %v1415_v48  ;;  %v1416_v16 = vunpack.i.l.bf16 %v1415_v48  ;;  %v1412_v56 = vunpack.i.h.bf16 %v1410_v21  ;;  %v1411_v22 = vunpack.i.l.bf16 %v1410_v21  ;;  %573 = vst.msk [vmem:[#allocation2 + $0x48] sm:$0xff] %vm563_vm5, %v1437_v53 }
  0xc6   : > { %564 = vst.msk [vmem:[#allocation2] sm:$0xff] %vm563_vm5, %v1416_v16  ;;  %1614 = vrot.lane.b32.xlu2 %v1977_v23, %s1758_s7 }
  0xc7   : > { %565 = vst.msk [vmem:[#allocation2 + $0x8] sm:$0xff] %vm563_vm5, %v1417_v3 }
  0xc8   : > { %512 = vst.msk [vmem:[#allocation2 + $0x78] sm:$0xff] %vm496_vm4, %v1412_v56  ;;  %v1450_v31 = vpop.permute.xlu2 %1449 }
  0xc9   : > { %511 = vst.msk [vmem:[#allocation2 + $0x70] sm:$0xff] %vm496_vm4, %v1411_v22  ;;  %1639 = vrot.lane.b32.xlu1 %v1638_v58, %s1754_s30  ;;  %1634 = vrot.lane.b32.xlu0 %v2208_v2, %s1755_s4  ;;  %v1451_v38 = vunpack.i.l.bf16 %v1450_v31  ;;  %v1452_v40 = vunpack.i.h.bf16 %v1450_v31 }
  0xcb   : > { %v1430_v20 = vpop.permute.xlu1 %1429  ;;  %v1425_v29 = vpop.permute.xlu0 %1424  ;;  %635 = vst.msk [vmem:[#allocation2] sm:$0xff] %vm634_vm7, %v1451_v38 }
  0xcc   : > { %v1432_v8 = vunpack.i.h.bf16 %v1430_v20  ;;  %v1431_v12 = vunpack.i.l.bf16 %v1430_v20  ;;  %v1427_v32 = vunpack.i.h.bf16 %v1425_v29  ;;  %v1426_v23 = vunpack.i.l.bf16 %v1425_v29  ;;  %636 = vst.msk [vmem:[#allocation2 + $0x8] sm:$0xff] %vm634_vm7, %v1452_v40 }
  0xce   : > { %570 = vst.msk [vmem:[#allocation2 + $0x30] sm:$0xff] %vm563_vm5, %v1431_v12  ;;  %1629 = vrot.lane.b32.xlu2 %v2177_v1, %s1756_s5 }
  0xcf   : > { %571 = vst.msk [vmem:[#allocation2 + $0x38] sm:$0xff] %vm563_vm5, %v1432_v8 }
  0xd0   : > { %569 = vst.msk [vmem:[#allocation2 + $0x28] sm:$0xff] %vm563_vm5, %v1427_v32  ;;  %v1465_v37 = vpop.permute.xlu2 %1464 }
  0xd1   : > { %568 = vst.msk [vmem:[#allocation2 + $0x20] sm:$0xff] %vm563_vm5, %v1426_v23  ;;  %1649 = vrot.lane.b32.xlu0 %v1648_v35, %s1757_s6  ;;  %v1466_v4 = vunpack.i.l.bf16 %v1465_v37  ;;  %v1467_v5 = vunpack.i.h.bf16 %v1465_v37 }
  0xd3   : > { %v1445_v45 = vpop.permute.xlu1 %1444  ;;  %v1440_v6 = vpop.permute.xlu0 %1439 }
  0xd4   : > { %v1447_v46 = vunpack.i.h.bf16 %v1445_v45  ;;  %v1446_v2 = vunpack.i.l.bf16 %v1445_v45  ;;  %v1442_v50 = vunpack.i.h.bf16 %v1440_v6  ;;  %v1441_v51 = vunpack.i.l.bf16 %v1440_v6 }
  0xd6   : > { %576 = vst.msk [vmem:[#allocation2 + $0x60] sm:$0xff] %vm563_vm5, %v1446_v2  ;;  %1644 = vrot.lane.b32.xlu2 %v1643_v54, %s1758_s7 }
  0xd7   : > { %577 = vst.msk [vmem:[#allocation2 + $0x68] sm:$0xff] %vm563_vm5, %v1447_v46 }
  0xd8   : > { %575 = vst.msk [vmem:[#allocation2 + $0x58] sm:$0xff] %vm563_vm5, %v1442_v50  ;;  %v1480_v43 = vpop.permute.xlu2 %1479 }
  0xd9   : > { %574 = vst.msk [vmem:[#allocation2 + $0x50] sm:$0xff] %vm563_vm5, %v1441_v51  ;;  %v1481_v33 = vunpack.i.l.bf16 %v1480_v43  ;;  %v1482_v36 = vunpack.i.h.bf16 %v1480_v43 }
  0xdb   : > { %v1460_v1 = vpop.permute.xlu1 %1459  ;;  %v1455_v55 = vpop.permute.xlu0 %1454 }
  0xdc   : > { %v1461_v60 = vunpack.i.l.bf16 %v1460_v1  ;;  %v1457_v52 = vunpack.i.h.bf16 %v1455_v55  ;;  %v1456_v61 = vunpack.i.l.bf16 %v1455_v55  ;;  %v1462_v62 = vunpack.i.h.bf16 %v1460_v1 }
  0xde   : > { %705 = vst.msk [vmem:[#allocation2] sm:$0xff] %vm704_vm8, %v1456_v61 }
  0xdf   : > { %706 = vst.msk [vmem:[#allocation2 + $0x8] sm:$0xff] %vm704_vm8, %v1457_v52 }
  0xe0   : > { %772 = vst.msk [vmem:[#allocation2] sm:$0xff] %vm771_vm9, %v1461_v60  ;;  %v1495_v25 = vpop.permute.xlu2 %1494 }
  0xe1   : > { %773 = vst.msk [vmem:[#allocation2 + $0x8] sm:$0xff] %vm771_vm9, %v1462_v62  ;;  %v1496_v21 = vunpack.i.l.bf16 %v1495_v25  ;;  %v1497_v26 = vunpack.i.h.bf16 %v1495_v25 }
  0xe2   : > { %843 = vst.msk [vmem:[#allocation2] sm:$0xff] %vm842_vm10, %v1466_v4 }
  0xe3   : > { %v1475_v7 = vpop.permute.xlu1 %1474  ;;  %844 = vst.msk [vmem:[#allocation2 + $0x8] sm:$0xff] %vm842_vm10, %v1467_v5  ;;  %v1470_v14 = vpop.permute.xlu0 %1469 }
  0xe4   : > { %v1477_v11 = vunpack.i.h.bf16 %v1475_v7  ;;  %v1476_v13 = vunpack.i.l.bf16 %v1475_v7  ;;  %v1472_v28 = vunpack.i.h.bf16 %v1470_v14  ;;  %v1471_v59 = vunpack.i.l.bf16 %v1470_v14 }
  0xe6   : > { %639 = vst.msk [vmem:[#allocation2 + $0x20] sm:$0xff] %vm634_vm7, %v1476_v13 }
  0xe7   : > { %640 = vst.msk [vmem:[#allocation2 + $0x28] sm:$0xff] %vm634_vm7, %v1477_v11 }
  0xe8   : > { %913 = vst.msk [vmem:[#allocation2] sm:$0xff] %vm912_vm11, %v1471_v59  ;;  %v1510_v57 = vpop.permute.xlu2 %1509 }
  0xe9   : > { %914 = vst.msk [vmem:[#allocation2 + $0x8] sm:$0xff] %vm912_vm11, %v1472_v28  ;;  %v1511_v18 = vunpack.i.l.bf16 %v1510_v57  ;;  %v1512_v20 = vunpack.i.h.bf16 %v1510_v57 }
  0xea   : > { %709 = vst.msk [vmem:[#allocation2 + $0x20] sm:$0xff] %vm704_vm8, %v1481_v33 }
  0xeb   : > { %710 = vst.msk [vmem:[#allocation2 + $0x28] sm:$0xff] %vm704_vm8, %v1482_v36  ;;  %v1490_v41 = vpop.permute.xlu1 %1489  ;;  %v1485_v49 = vpop.permute.xlu0 %1484 }
  0xec   : > { %v1492_v42 = vunpack.i.h.bf16 %v1490_v41  ;;  %v1491_v48 = vunpack.i.l.bf16 %v1490_v41  ;;  %v1487_v3 = vunpack.i.h.bf16 %v1485_v49  ;;  %v1486_v16 = vunpack.i.l.bf16 %v1485_v49 }
  0xee   : > { %776 = vst.msk [vmem:[#allocation2 + $0x20] sm:$0xff] %vm771_vm9, %v1491_v48 }
  0xef   : > { %777 = vst.msk [vmem:[#allocation2 + $0x28] sm:$0xff] %vm771_vm9, %v1492_v42  ;;  %v929_v56 = vld [vmem:[#allocation2] sm:$0xff] }
  0xf0   : > { %643 = vst.msk [vmem:[#allocation2 + $0x40] sm:$0xff] %vm634_vm7, %v1486_v16  ;;  %v930_v22 = vld [vmem:[#allocation2 + $0x8] sm:$0xff]  ;;  %v1525_v30 = vpop.permute.xlu2 %1524 }
  0xf1   : > { %644 = vst.msk [vmem:[#allocation2 + $0x48] sm:$0xff] %vm634_vm7, %v1487_v3  ;;  %v945_v58 = vpack.c.bf16 %v930_v22, %v929_v56  ;;  %v1526_v19 = vunpack.i.l.bf16 %v1525_v30  ;;  %v1527_v24 = vunpack.i.h.bf16 %v1525_v30 }
  0xf2   : > { %713 = vst.msk [vmem:[#allocation2 + $0x40] sm:$0xff] %vm704_vm8, %v1496_v21 }
  0xf3   : > { %714 = vst.msk [vmem:[#allocation2 + $0x48] sm:$0xff] %vm704_vm8, %v1497_v26  ;;  %1205 = vmatmul.msk.bf16.vlgmr.msra.gmra.mxu0 %vm977_vm12, %v945_v58  ;;  %v1505_v0 = vpop.permute.xlu1 %1504  ;;  %v1500_v9 = vpop.permute.xlu0 %1499 }
  0xf4   : > { %v1507_v63 = vunpack.i.h.bf16 %v1505_v0  ;;  %v1506_v53 = vunpack.i.l.bf16 %v1505_v0  ;;  %v1502_v15 = vunpack.i.h.bf16 %v1500_v9  ;;  %v1501_v17 = vunpack.i.l.bf16 %v1500_v9  ;;  %637 = vst.msk [vmem:[#allocation2 + $0x10] sm:$0xff] %vm634_vm7, %v1526_v19 }
  0xf5   : > { %638 = vst.msk [vmem:[#allocation2 + $0x18] sm:$0xff] %vm634_vm7, %v1527_v24 }
  0xf6   : > { %780 = vst.msk [vmem:[#allocation2 + $0x40] sm:$0xff] %vm771_vm9, %v1506_v53 }
  0xf7   : > { %781 = vst.msk [vmem:[#allocation2 + $0x48] sm:$0xff] %vm771_vm9, %v1507_v63 }
  0xf8   : > { %847 = vst.msk [vmem:[#allocation2 + $0x20] sm:$0xff] %vm842_vm10, %v1501_v17  ;;  %v1540_v29 = vpop.permute.xlu2 %1539 }
  0xf9   : > { %848 = vst.msk [vmem:[#allocation2 + $0x28] sm:$0xff] %vm842_vm10, %v1502_v15  ;;  %v1541_v2 = vunpack.i.l.bf16 %v1540_v29  ;;  %v1542_v6 = vunpack.i.h.bf16 %v1540_v29 }
  0xfa   : > { %917 = vst.msk [vmem:[#allocation2 + $0x20] sm:$0xff] %vm912_vm11, %v1511_v18 }
  0xfb   : > { %918 = vst.msk [vmem:[#allocation2 + $0x28] sm:$0xff] %vm912_vm11, %v1512_v20  ;;  %v1520_v8 = vpop.permute.xlu1 %1519  ;;  %v1515_v12 = vpop.permute.xlu0 %1514 }
  0xfc   : > { %v1521_v31 = vunpack.i.l.bf16 %v1520_v8  ;;  %v1517_v32 = vunpack.i.h.bf16 %v1515_v12  ;;  %v1516_v23 = vunpack.i.l.bf16 %v1515_v12  ;;  %v1522_v35 = vunpack.i.h.bf16 %v1520_v8 }
  0xfe   : > { %851 = vst.msk [vmem:[#allocation2 + $0x40] sm:$0xff] %vm842_vm10, %v1516_v23 }
  0xff   : > { %852 = vst.msk [vmem:[#allocation2 + $0x48] sm:$0xff] %vm842_vm10, %v1517_v32 }
 0x100   : > { %921 = vst.msk [vmem:[#allocation2 + $0x40] sm:$0xff] %vm912_vm11, %v1521_v31  ;;  %v1555_v27 = vpop.permute.xlu2 %1554 }
 0x101   : > { %v933_v38 = vld [vmem:[#allocation2 + $0x20] sm:$0xff]  ;;  %922 = vst.msk [vmem:[#allocation2 + $0x48] sm:$0xff] %vm912_vm11, %v1522_v35  ;;  %v1556_v62 = vunpack.i.l.bf16 %v1555_v27  ;;  %v1557_v4 = vunpack.i.h.bf16 %v1555_v27 }
 0x102   : > { %v934_v39 = vld [vmem:[#allocation2 + $0x28] sm:$0xff] }
 0x103   : > { %v947_v40 = vpack.c.bf16 %v934_v39, %v933_v38  ;;  %v1535_v44 = vpop.permute.xlu1 %1534  ;;  %v1530_v45 = vpop.permute.xlu0 %1529 }
 0x104   : > { %v1537_v34 = vunpack.i.h.bf16 %v1535_v44  ;;  %v1536_v47 = vunpack.i.l.bf16 %v1535_v44  ;;  %v1532_v10 = vunpack.i.h.bf16 %v1530_v45  ;;  %v1531_v46 = vunpack.i.l.bf16 %v1530_v45 }
 0x105   : > { %1207 = vmatmul.msk.bf16.vlgmr.msra.gmra.mxu1 %vm977_vm12, %v947_v40 }
 0x106   : > { %647 = vst.msk [vmem:[#allocation2 + $0x60] sm:$0xff] %vm634_vm7, %v1536_v47 }
 0x107   : > { %648 = vst.msk [vmem:[#allocation2 + $0x68] sm:$0xff] %vm634_vm7, %v1537_v34  ;;  %v937_v37 = vld [vmem:[#allocation2 + $0x40] sm:$0xff] }
 0x108   : > { %707 = vst.msk [vmem:[#allocation2 + $0x10] sm:$0xff] %vm704_vm8, %v1531_v46  ;;  %v938_v50 = vld [vmem:[#allocation2 + $0x48] sm:$0xff]  ;;  %v1570_v60 = vpop.permute.xlu2 %1569 }
 0x109   : > { %708 = vst.msk [vmem:[#allocation2 + $0x18] sm:$0xff] %vm704_vm8, %v1532_v10  ;;  %v949_v51 = vpack.c.bf16 %v938_v50, %v937_v37  ;;  %v1571_v59 = vunpack.i.l.bf16 %v1570_v60  ;;  %v1572_v33 = vunpack.i.h.bf16 %v1570_v60 }
 0x10a   : > { %774 = vst.msk [vmem:[#allocation2 + $0x10] sm:$0xff] %vm771_vm9, %v1541_v2 }
 0x10b   : > { %775 = vst.msk [vmem:[#allocation2 + $0x18] sm:$0xff] %vm771_vm9, %v1542_v6  ;;  %v1550_v54 = vpop.permute.xlu1 %1549  ;;  %1209 = vmatmul.msk.bf16.vlgmr.msra.gmra.mxu2 %vm977_vm12, %v949_v51  ;;  %v1545_v43 = vpop.permute.xlu0 %1544 }
 0x10c   : > { %v1552_v1 = vunpack.i.h.bf16 %v1550_v54  ;;  %v1551_v55 = vunpack.i.l.bf16 %v1550_v54  ;;  %v1547_v52 = vunpack.i.h.bf16 %v1545_v43  ;;  %v1546_v61 = vunpack.i.l.bf16 %v1545_v43 }
 0x10e   : > { %845 = vst.msk [vmem:[#allocation2 + $0x10] sm:$0xff] %vm842_vm10, %v1551_v55 }
 0x10f   : > { %846 = vst.msk [vmem:[#allocation2 + $0x18] sm:$0xff] %vm842_vm10, %v1552_v1 }
 0x110   : > { %717 = vst.msk [vmem:[#allocation2 + $0x60] sm:$0xff] %vm704_vm8, %v1546_v61  ;;  %v1585_v14 = vpop.permute.xlu2 %1584 }
 0x111   : > { %718 = vst.msk [vmem:[#allocation2 + $0x68] sm:$0xff] %vm704_vm8, %v1547_v52  ;;  %v1586_v36 = vunpack.i.l.bf16 %v1585_v14  ;;  %v1587_v41 = vunpack.i.h.bf16 %v1585_v14 }
 0x112   : > { %784 = vst.msk [vmem:[#allocation2 + $0x60] sm:$0xff] %vm771_vm9, %v1556_v62 }
 0x113   : > { %785 = vst.msk [vmem:[#allocation2 + $0x68] sm:$0xff] %vm771_vm9, %v1557_v4  ;;  %v1565_v5 = vpop.permute.xlu1 %1564  ;;  %v1560_v13 = vpop.permute.xlu0 %1559 }
 0x114   : > { %v1567_v7 = vunpack.i.h.bf16 %v1565_v5  ;;  %v1566_v11 = vunpack.i.l.bf16 %v1565_v5  ;;  %v1562_v25 = vunpack.i.h.bf16 %v1560_v13  ;;  %v1561_v28 = vunpack.i.l.bf16 %v1560_v13  ;;  %645 = vst.msk [vmem:[#allocation2 + $0x50] sm:$0xff] %vm634_vm7, %v1586_v36 }
 0x115   : > { %646 = vst.msk [vmem:[#allocation2 + $0x58] sm:$0xff] %vm634_vm7, %v1587_v41 }
 0x116   : > { %855 = vst.msk [vmem:[#allocation2 + $0x60] sm:$0xff] %vm842_vm10, %v1566_v11 }
 0x117   : > { %856 = vst.msk [vmem:[#allocation2 + $0x68] sm:$0xff] %vm842_vm10, %v1567_v7 }
 0x118   : > { %915 = vst.msk [vmem:[#allocation2 + $0x10] sm:$0xff] %vm912_vm11, %v1561_v28  ;;  %v1600_v21 = vpop.permute.xlu2 %1599 }
 0x119   : > { %916 = vst.msk [vmem:[#allocation2 + $0x18] sm:$0xff] %vm912_vm11, %v1562_v25  ;;  %v1601_v20 = vunpack.i.l.bf16 %v1600_v21  ;;  %v1602_v19 = vunpack.i.h.bf16 %v1600_v21 }
 0x11a   : > { %925 = vst.msk [vmem:[#allocation2 + $0x60] sm:$0xff] %vm912_vm11, %v1571_v59 }
 0x11b   : > { %926 = vst.msk [vmem:[#allocation2 + $0x68] sm:$0xff] %vm912_vm11, %v1572_v33  ;;  %v1580_v42 = vpop.permute.xlu1 %1579  ;;  %v1575_v48 = vpop.permute.xlu0 %1574 }
 0x11c   : > { %v1581_v49 = vunpack.i.l.bf16 %v1580_v42  ;;  %v1577_v57 = vunpack.i.h.bf16 %v1575_v48  ;;  %v1576_v3 = vunpack.i.l.bf16 %v1575_v48  ;;  %v1582_v16 = vunpack.i.h.bf16 %v1580_v42  ;;  %v1653_v42 = vld [vmem:[%s2438_s2] ss:$0 sm:$0xff] }
 0x11e   : > { %642 = vst.msk [vmem:[#allocation2 + $0x38] sm:$0xff] %vm634_vm7, %v1577_v57 }
 0x11f   : > { %v931_v26 = vld [vmem:[#allocation2 + $0x10] sm:$0xff]  ;;  %641 = vst.msk [vmem:[#allocation2 + $0x30] sm:$0xff] %vm634_vm7, %v1576_v3 }
 0x120   : > { %v932_v56 = vld [vmem:[#allocation2 + $0x18] sm:$0xff]  ;;  %711 = vst.msk [vmem:[#allocation2 + $0x30] sm:$0xff] %vm704_vm8, %v1581_v49  ;;  %v1615_v24 = vpop.permute.xlu2 %1614 }
 0x121   : > { %v946_v22 = vpack.c.bf16 %v932_v56, %v931_v26  ;;  %v941_v58 = vld [vmem:[#allocation2 + $0x60] sm:$0xff]  ;;  %712 = vst.msk [vmem:[#allocation2 + $0x38] sm:$0xff] %vm704_vm8, %v1582_v16  ;;  %v1616_v35 = vunpack.i.l.bf16 %v1615_v24  ;;  %v1617_v38 = vunpack.i.h.bf16 %v1615_v24 }
 0x122   : > { %v942_v0 = vld [vmem:[#allocation2 + $0x68] sm:$0xff] }
 0x123   : > { %1206 = vmatmul.msk.bf16.gmra.mxu0 %vm977_vm12, %v946_v22  ;;  %v951_v63 = vpack.c.bf16 %v942_v0, %v941_v58  ;;  %v1595_v53 = vpop.permute.xlu1 %1594  ;;  %v1590_v15 = vpop.permute.xlu0 %1589 }
 0x124   : > { %v1597_v9 = vunpack.i.h.bf16 %v1595_v53  ;;  %v1596_v30 = vunpack.i.l.bf16 %v1595_v53  ;;  %v1592_v17 = vunpack.i.h.bf16 %v1590_v15  ;;  %v1591_v18 = vunpack.i.l.bf16 %v1590_v15 }
 0x125   : > { %1211 = vmatmul.msk.bf16.vlgmr.msra.gmra.mxu3 %vm977_vm12, %v951_v63 }
 0x126   : > { %715 = vst.msk [vmem:[#allocation2 + $0x50] sm:$0xff] %vm704_vm8, %v1596_v30 }
 0x127   : > { %716 = vst.msk [vmem:[#allocation2 + $0x58] sm:$0xff] %vm704_vm8, %v1597_v9 }
 0x128   : > { %778 = vst.msk [vmem:[#allocation2 + $0x30] sm:$0xff] %vm771_vm9, %v1591_v18  ;;  %v1630_v39 = vpop.permute.xlu2 %1629 }
 0x129   : > { %779 = vst.msk [vmem:[#allocation2 + $0x38] sm:$0xff] %vm771_vm9, %v1592_v17  ;;  %v1631_v2 = vunpack.i.l.bf16 %v1630_v39  ;;  %v1632_v37 = vunpack.i.h.bf16 %v1630_v39 }
 0x12a   : > { %849 = vst.msk [vmem:[#allocation2 + $0x30] sm:$0xff] %vm842_vm10, %v1601_v20 }
 0x12b   : > { %850 = vst.msk [vmem:[#allocation2 + $0x38] sm:$0xff] %vm842_vm10, %v1602_v19  ;;  %v1610_v8 = vpop.permute.xlu1 %1609  ;;  %v1605_v31 = vpop.permute.xlu0 %1604 }
 0x12c   : > { %v1612_v12 = vunpack.i.h.bf16 %v1610_v8  ;;  %v1611_v29 = vunpack.i.l.bf16 %v1610_v8  ;;  %v1607_v32 = vunpack.i.h.bf16 %v1605_v31  ;;  %v1606_v23 = vunpack.i.l.bf16 %v1605_v31 }
 0x12e   : > { %919 = vst.msk [vmem:[#allocation2 + $0x30] sm:$0xff] %vm912_vm11, %v1611_v29 }
 0x12f   : > { %920 = vst.msk [vmem:[#allocation2 + $0x38] sm:$0xff] %vm912_vm11, %v1612_v12 }
 0x130   : > { %782 = vst.msk [vmem:[#allocation2 + $0x50] sm:$0xff] %vm771_vm9, %v1606_v23  ;;  %v1645_v54 = vpop.permute.xlu2 %1644 }
 0x131   : > { %783 = vst.msk [vmem:[#allocation2 + $0x58] sm:$0xff] %vm771_vm9, %v1607_v32  ;;  %v1646_v62 = vunpack.i.l.bf16 %v1645_v54  ;;  %v1647_v5 = vunpack.i.h.bf16 %v1645_v54 }
 0x132   : > { %853 = vst.msk [vmem:[#allocation2 + $0x50] sm:$0xff] %vm842_vm10, %v1616_v35 }
 0x133   : > { %854 = vst.msk [vmem:[#allocation2 + $0x58] sm:$0xff] %vm842_vm10, %v1617_v38  ;;  %v1625_v40 = vpop.permute.xlu1 %1624  ;;  %v1620_v44 = vpop.permute.xlu0 %1619 }
 0x134   : > { %v1626_v34 = vunpack.i.l.bf16 %v1625_v40  ;;  %v1622_v47 = vunpack.i.h.bf16 %v1620_v44  ;;  %v1621_v45 = vunpack.i.l.bf16 %v1620_v44  ;;  %v1627_v10 = vunpack.i.h.bf16 %v1625_v40 }
 0x135   : > { %v935_v27 = vld [vmem:[#allocation2 + $0x30] sm:$0xff] }
 0x136   : > { %v936_v46 = vld [vmem:[#allocation2 + $0x38] sm:$0xff]  ;;  %578 = vst.msk [vmem:[#allocation2 + $0x70] sm:$0xff] %vm563_vm5, %v1626_v34 }
 0x137   : > { %923 = vst.msk [vmem:[#allocation2 + $0x50] sm:$0xff] %vm912_vm11, %v1621_v45  ;;  %v948_v6 = vpack.c.bf16 %v936_v46, %v935_v27 }
 0x138   : > { %924 = vst.msk [vmem:[#allocation2 + $0x58] sm:$0xff] %vm912_vm11, %v1622_v47 }
 0x139   : > { %1208 = vmatmul.msk.bf16.gmra.mxu1 %vm977_vm12, %v948_v6  ;;  %579 = vst.msk [vmem:[#allocation2 + $0x78] sm:$0xff] %vm563_vm5, %v1627_v10 }
 0x13a   : > { %649 = vst.msk [vmem:[#allocation2 + $0x70] sm:$0xff] %vm634_vm7, %v1631_v2 }
 0x13b   : > { %650 = vst.msk [vmem:[#allocation2 + $0x78] sm:$0xff] %vm634_vm7, %v1632_v37  ;;  %v1640_v50 = vpop.permute.xlu1 %1639  ;;  %v1635_v51 = vpop.permute.xlu0 %1634 }
 0x13c   : > { %v1637_v1 = vunpack.i.h.bf16 %v1635_v51  ;;  %v1636_v55 = vunpack.i.l.bf16 %v1635_v51  ;;  %v1641_v43 = vunpack.i.l.bf16 %v1640_v50  ;;  %v1642_v52 = vunpack.i.h.bf16 %v1640_v50 }
 0x13e   : > { %v939_v60 = vld [vmem:[#allocation2 + $0x50] sm:$0xff]  ;;  %719 = vst.msk [vmem:[#allocation2 + $0x70] sm:$0xff] %vm704_vm8, %v1636_v55 }
 0x13f   : > { %v940_v61 = vld [vmem:[#allocation2 + $0x58] sm:$0xff]  ;;  %720 = vst.msk [vmem:[#allocation2 + $0x78] sm:$0xff] %vm704_vm8, %v1637_v1 }
 0x140   : > { %v950_v4 = vpack.c.bf16 %v940_v61, %v939_v60  ;;  %786 = vst.msk [vmem:[#allocation2 + $0x70] sm:$0xff] %vm771_vm9, %v1641_v43 }
 0x141   : > { %787 = vst.msk [vmem:[#allocation2 + $0x78] sm:$0xff] %vm771_vm9, %v1642_v52 }
 0x142   : > { %1210 = vmatmul.msk.bf16.gmra.mxu2 %vm977_vm12, %v950_v4  ;;  %857 = vst.msk [vmem:[#allocation2 + $0x70] sm:$0xff] %vm842_vm10, %v1646_v62 }
 0x143   : > { %858 = vst.msk [vmem:[#allocation2 + $0x78] sm:$0xff] %vm842_vm10, %v1647_v5  ;;  %v1650_v7 = vpop.permute.xlu0 %1649 }
 0x144   : > { %v1652_v11 = vunpack.i.h.bf16 %v1650_v7  ;;  %v1651_v13 = vunpack.i.l.bf16 %v1650_v7 }
 0x146   : > { %927 = vst.msk [vmem:[#allocation2 + $0x70] sm:$0xff] %vm912_vm11, %v1651_v13 }
 0x147   : > { %928 = vst.msk [vmem:[#allocation2 + $0x78] sm:$0xff] %vm912_vm11, %v1652_v11 }
 0x14d   : > { %v943_v14 = vld [vmem:[#allocation2 + $0x70] sm:$0xff] }
 0x14e   : > { %v944_v25 = vld [vmem:[#allocation2 + $0x78] sm:$0xff] }
 0x14f   : > { %v952_v28 = vpack.c.bf16 %v944_v25, %v943_v14 }
 0x151   : > { %1212 = vmatmul.msk.bf16.gmra.mxu3 %vm977_vm12, %v952_v28 }
 0x170   : > { %v1015_v59 = vpop.f32.mrf.mxu0 }
 0x171   : > { %v1016_v3 = vadd.f32 %v1653_v42, %v1015_v59 }
 0x173   : > { %v1055_v22 = vmax.f32 %v1016_v3, 0.0 }
 0x178   : > { %v1017_v33 = vpop.f32.mrf.mxu0 }
 0x179   : > { %v1018_v49 = vadd.f32 %v1653_v42, %v1017_v33 }
 0x17b   : > { %v1056_v26 = vmax.f32 %v1018_v49, 0.0  ;;  %v1071_v49 = vld [vmem:[%s1860_s20] sm:$0x1] }
 0x17d   : > { %v1072_v63 = vadd.f32 %v1056_v26, %v1055_v22 }
 0x182   : > { %v1025_v36 = vpop.f32.mrf.mxu1 }
 0x183   : > { %v1026_v9 = vadd.f32 %v1653_v42, %v1025_v36 }
 0x185   : > { %v1059_v18 = vmax.f32 %v1026_v9, 0.0 }
 0x18a   : > { %v1027_v48 = vpop.f32.mrf.mxu1 }
 0x18b   : > { %v1028_v20 = vadd.f32 %v1653_v42, %v1027_v48 }
 0x18d   : > { %v1060_v29 = vmax.f32 %v1028_v20, 0.0 }
 0x18e   : > { %v1035_v21 = vpop.f32.mrf.mxu2 }
 0x18f   : > { %v1036_v39 = vadd.f32 %v1653_v42, %v1035_v21 }
 0x191   : > { %v1063_v34 = vmax.f32 %v1036_v39, 0.0 }
 0x196   : > { %v1037_v17 = vpop.f32.mrf.mxu2 }
 0x197   : > { %v1038_v47 = vadd.f32 %v1653_v42, %v1037_v17 }
 0x199   : > { %v1064_v2 = vmax.f32 %v1038_v47, 0.0 }
 0x1a0   : > { %v1020_v41 = vpop.f32.mrf.mxu0 }
 0x1a1   : > { %v1021_v16 = vadd.f32 %v1653_v42, %v1020_v41 }
 0x1a3   : > { %v1057_v58 = vmax.f32 %v1021_v16, 0.0 }
 0x1a5   : > { %v1073_v30 = vadd.f32 %v1072_v63, %v1057_v58 }
 0x1a8   : > { %v1022_v57 = vpop.f32.mrf.mxu0  ;;  %v1045_v32 = vpop.f32.mrf.mxu3 }
 0x1a9   : > { %v1023_v56 = vadd.f32 %v1653_v42, %v1022_v57  ;;  %v1046_v54 = vadd.f32 %v1653_v42, %v1045_v32 }
 0x1ab   : > { %v1058_v53 = vmax.f32 %v1023_v56, 0.0  ;;  %v1067_v60 = vmax.f32 %v1046_v54, 0.0 }
 0x1ad   : > { %v1074_v15 = vadd.f32 %v1073_v30, %v1058_v53 }
 0x1af   : > { %v1075_v8 = vadd.f32 %v1074_v15, %v1059_v18 }
 0x1b0   : > { %v1047_v10 = vpop.f32.mrf.mxu3 }
 0x1b1   : > { %v1076_v23 = vadd.f32 %v1075_v8, %v1060_v29  ;;  %v1048_v52 = vadd.f32 %v1653_v42, %v1047_v10 }
 0x1b3   : > { %v1068_v4 = vmax.f32 %v1048_v52, 0.0 }
 0x1b6   : > { %v1030_v0 = vpop.f32.mrf.mxu1 }
 0x1b7   : > { %v1031_v19 = vadd.f32 %v1653_v42, %v1030_v0 }
 0x1b9   : > { %v1061_v31 = vmax.f32 %v1031_v19, 0.0 }
 0x1bb   : > { %v1077_v40 = vadd.f32 %v1076_v23, %v1061_v31 }
 0x1be   : > { %v1032_v24 = vpop.f32.mrf.mxu1 }
 0x1bf   : > { %v1033_v12 = vadd.f32 %v1653_v42, %v1032_v24 }
 0x1c1   : > { %v1062_v35 = vmax.f32 %v1033_v12, 0.0 }
 0x1c3   : > { %v1078_v44 = vadd.f32 %v1077_v40, %v1062_v35 }
 0x1c5   : > { %v1040_v38 = vpop.f32.mrf.mxu2  ;;  %v1079_v45 = vadd.f32 %v1078_v44, %v1063_v34 }
 0x1c6   : > { %v1041_v27 = vadd.f32 %v1653_v42, %v1040_v38 }
 0x1c7   : > { %v1080_v50 = vadd.f32 %v1079_v45, %v1064_v2 }
 0x1c8   : > { %v1065_v37 = vmax.f32 %v1041_v27, 0.0 }
 0x1ca   : > { %v1081_v1 = vadd.f32 %v1080_v50, %v1065_v37 }
 0x1cd   : > { %v1042_v46 = vpop.f32.mrf.mxu2 }
 0x1ce   : > { %v1043_v6 = vadd.f32 %v1653_v42, %v1042_v46 }
 0x1d0   : > { %v1066_v51 = vmax.f32 %v1043_v6, 0.0 }
 0x1d2   : > { %v1082_v43 = vadd.f32 %v1081_v1, %v1066_v51 }
 0x1d4   : > { %v1050_v55 = vpop.f32.mrf.mxu3  ;;  %v1083_v62 = vadd.f32 %v1082_v43, %v1067_v60 }
 0x1d5   : > { %v1051_v61 = vadd.f32 %v1653_v42, %v1050_v55 }
 0x1d6   : > { %v1084_v11 = vadd.f32 %v1083_v62, %v1068_v4 }
 0x1d7   : > { %v1069_v5 = vmax.f32 %v1051_v61, 0.0 }
 0x1d9   : > { %v1085_v14 = vadd.f32 %v1084_v11, %v1069_v5 }
 0x1dc   : > { %v1052_v7 = vpop.f32.mrf.mxu3 }
 0x1dd   : > { %v1053_v13 = vadd.f32 %v1653_v42, %v1052_v7 }
 0x1df   : > { %v1070_v25 = vmax.f32 %v1053_v13, 0.0 }
 0x1e1   : > { %v1086_v28 = vadd.f32 %v1085_v14, %v1070_v25 }
 0x1e3   : > { %v1087_v59 = vrot.slane %v1086_v28, 4 }
 0x1e5   : > { %v1088_v33 = vadd.f32 %v1087_v59, %v1086_v28 }
 0x1e7   : > { %v1089_v36 = vrot.slane %v1088_v33, 2 }
 0x1e9   : > { %v1090_v41 = vadd.f32 %v1089_v36, %v1088_v33 }
 0x1eb   : > { %v1091_v48 = vrot.slane %v1090_v41, 1 }
 0x1ed   : > { %v1092_v57 = vadd.f32 %v1091_v48, %v1090_v41  ;;  %1098 = sbr.rel (%p1213_p1) target bundleno = 508 (0x1fc), region = 40 }
 0x1ef   : > { %v1093_v3 = vadd.f32 %v1092_v57, %v1071_v49 }
 0x1f1   : > { %1094 = vst [vmem:[%s1860_s20] sm:$0x1] %v1093_v3 }
 0x1f8   : > { %v1099_v16 = vld [vmem:[%s1860_s20] sm:$0x1] }
 0x1f9   : > { %v1100_v21 = vmul.f32 0.00390625, %v1099_v16 }
 0x1fb   : > { %1101 = vst [vmem:[%s1860_s20] sm:$0x1] %v1100_v21 }
 0x1fc PF: > { %s1111_s6 = scalar_lea.hbm %s2439_s3, %s1736_s16  ;;  %s1113_s7 = sshll.u32 %s1860_s20, 4  ;;  %s1114_s7 = int_to_ptr.vmem [resolvable:$true] %s1113_s7 }
 0x1fd   : > { %s1115_s8 = sshll.u32 %s1111_s6, 4  ;;  %s1103_s15 = scalar_lea.sflag [#allocation4], %s183_s29  ;;  %s1116_s8 = int_to_ptr.hbm [resolvable:$true] %s1115_s8 }
 0x1fe   : > { %s1668_s9 = sshra.s32 %s1116_s8, 4  ;;  %s1674_s26 = scalar_lea.hbm %s2439_s3, 2  ;;  %s1669_s9 = int_to_ptr.hbm [resolvable:$true] %s1668_s9 }
 0x1ff   : > { %s1670_s10 = scalar_lea.hbm %s1669_s9, 1  ;;  %p1675_p6 = scmp.lt.s32.totalorder %s1669_s9, %s2439_s3 }
 0x200   : > { %p1671_p2 = scmp.ne.s32.totalorder %s1669_s9, %s1670_s10  ;;  %p1676_p7 = scmp.lt.s32.totalorder %s1674_s26, %s1670_s10 }
 0x202   : > { %p1672_p4 = pnand %p1671_p2, %p1828_p3  ;;  %p1677_p8 = por %p1676_p7, %p1675_p6 }
 0x204   : > { %p1673_p5 = pneg %p1672_p4 }
 0x206   : > { %p1678_p10 = pnand %p1677_p8, %p1673_p5 }
 0x208   : > { %1681 = shalt.err (!%p1678_p10)
}
 0x209   : > { %1253 = dma.vmem_to_hbm [thread:$0]  (%p1828_p3), %s1114_s7, 16, %s1116_s8, %s1103_s15  }
 0x20a PF: > { %p1259_p11 = scmp.ge.s32.totalorder %s1748_s19, 2  ;;  %s1127_s16 = sand.u32 1, %s1720_s12  }
 0x20b   : > { %s1128_s29 = scalar_lea.sflag [#allocation4], %s1127_s16 }
 0x20c   : > { %p1256_p12 = pnand %p1259_p11, %p1838_p9 }
 0x20e   : > { %p1257_p13 = pneg %p1256_p12 }
 0x210   : > { %1715 = dma.done.wait (%p1257_p13), %s1128_s29, 16  }
 0x211   : > { %1717 = vsyncadd (%p1257_p13), %s1128_s29, 4294967280  ;;  %s16_s19 = sadd.s32 1, %s1748_s19   ;;  %s2442_s12 = smov %s1724_s13 }
 0x212   : > { %p13_p0 = scmp.ge.s32.totalorder %s16_s19, 6   ;;  %s2443_s13 = smov %s1728_s14 }
 0x213   : > { %s2444_s14 = smov %s1846_s28  ;;  %s2445_s15 = smov %s1740_s17 }
 0x214   : > { %s2446_s16 = smov %s1744_s18  ;;  %s2447_s17 = smov %s2450_s22 }
 0x215   : > { %s2448_s18 = smov %s2454_s23  ;;  %15 = sbr.rel (!%p13_p0) target bundleno = 5 (0x5), region = 75 }
 0x21a   :  { %1133 = vsyncpa [#allocation4], 1 }
 0x21b   :  { %1135 = vsyncpa [#allocation4 + $0x1], 1 }

</bundles_post_ra>
